<compile_context>
chip_gen: v7x
topology: tpu7x:2x2x1
jax: 0.10.0
libtpu: 0.0.40
codegen_flags: <defaults>
</compile_context>

<pallas_src>
from functools import reduce
from operator import __add__

import jax
import jax.numpy as jnp
from jax.experimental import pallas as pl
from jax.experimental.pallas import tpu as pltpu


def _conv_padding(kernel_size):
    # Exact replica of the module's formula; returns (left, right, top, bottom)
    # as consumed by nn.ZeroPad2d ("same"-style asymmetric pad, stride 1 only).
    return reduce(
        __add__,
        [(k // 2 + (k - 2 * (k // 2)) - 1, k // 2) for k in kernel_size[::-1]],
    )


def _round_up(x, m):
    return pl.cdiv(x, m) * m


def _pick_tm(m, block_m):
    """Largest multiple of 8 <= block_m that divides m exactly (so Mp == M and no
    extra full-slab row-pad copy is needed). Returns None if no such tile exists."""
    cap = min(block_m, m)
    cap -= cap % 8
    for t in range(cap, 0, -8):
        if m % t == 0:
            return t
    return None


# ---------------------------------------------------------------------------
# Pass 1: conv-as-matmul + ReLU, stage y (bf16) for pass 2, accumulate per-core
#         per-channel sum / sum-of-squares.
# ---------------------------------------------------------------------------
def _conv_relu_stats_kernel(p_ref, w_ref, y_ref, stats_ref):
    # p_ref:     (TM, Kp) bf16  im2col patches tile
    # w_ref:     (Kp, Cp) bf16  conv weight as a matmul operand (grid-invariant)
    # y_ref:     (TM, Cp) bf16  relu(conv) tile, staged to HBM for pass 2
    # stats_ref: (8,  Cp) f32   per-core accumulator (row 0 = sum, row 1 = sum sq);
    #            its block index is constant along the M ("arbitrary") axis so it
    #            stays VMEM-resident and accumulates across the core's M tiles.
    @pl.when(pl.program_id(1) == 0)
    def _init():
        stats_ref[...] = jnp.zeros_like(stats_ref)

    y = jnp.dot(p_ref[...], w_ref[...], preferred_element_type=jnp.float32)
    y = jnp.maximum(y, 0.0)                                   # F.relu
    y_ref[...] = y.astype(y_ref.dtype)                        # staged for pass 2
    # NOTE: the two 1-sublane RMW updates below lower to masked vst; per the perf
    # review this is hidden under the DMA of this mem-bound kernel, so it is kept
    # simple rather than restructured into full-vreg accumulators.
    stats_ref[0:1, :] += jnp.sum(y, axis=0, keepdims=True)
    stats_ref[1:2, :] += jnp.sum(y * y, axis=0, keepdims=True)


# ---------------------------------------------------------------------------
# Pass 2: pure elementwise folded-BatchNorm affine over the staged activations.
# ---------------------------------------------------------------------------
def _bn_apply_kernel(y_ref, scale_ref, shift_ref, out_ref):
    # scale_ref/shift_ref: (1, Cp) f32 per-channel folded BN affine.
    out_ref[...] = y_ref[...].astype(jnp.float32) * scale_ref[...] + shift_ref[...]


def basic_conv2d(x_nchw, weight_oihw, gamma, beta, kernel_size,
                 eps=1e-5, block_m=1024):
    """Forward of BasicConv2d (stride 1). x: (N,Cin,H,W) f32 -> (N,Cout,H,W) f32."""
    N, Cin, H, W = x_nchw.shape
    kh, kw = kernel_size
    Cout = weight_oihw.shape[0]
    assert block_m % 8 == 0
    left, right, top, bottom = _conv_padding(kernel_size)

    M = N * H * W                       # im2col rows
    K = kh * kw * Cin                   # contraction dim
    # Lane-dense MXU feed / output channels (unmasked vst).  TODO(synk): round to
    # 256 instead when a compute-bound configuration appears (v6e/v7x 256x256 MXU).
    Kp = _round_up(K, 128)
    Cp = _round_up(Cout, 128)

    TM = _pick_tm(M, block_m)
    if TM is None:
        # M has no multiple-of-8 divisor <= block_m; fall back to a small row pad.
        # TODO(synk): mask the tail rows in-kernel instead of padding the slab.
        TM = min(block_m, _round_up(M, 8))
        Mp = _round_up(M, TM)
    else:
        Mp = M
    num_tiles = Mp // TM
    # 2-D pass-1 grid: leading "parallel" core axis (v7x megacore; harmless on the
    # single-TensorCore v5e/v6e where it just runs sequentially) x trailing
    # "arbitrary" M-reduction axis, with one stats block per core (no shared
    # accumulator across cores).
    nc = 2 if num_tiles % 2 == 0 else 1
    steps = num_tiles // nc

    # ---- glue: NCHW -> NHWC, asymmetric zero-pad, im2col slab born at width Kp --
    # TODO(synk): for large Cin a direct-conv variant (halo-tiled NHWC input +
    # per-tap accumulated matmuls) would remove the kh*kw HBM duplication of this
    # slab entirely; kept as im2col here for the lane/MXU-friendly packed-K layout.
    x = jnp.transpose(x_nchw, (0, 2, 3, 1)).astype(jnp.bfloat16)        # NHWC
    xpad = jnp.pad(x, ((0, 0), (top, bottom), (left, right), (0, 0)))
    taps = [xpad[:, dy:dy + H, dx:dx + W, :]                            # (N,H,W,Cin)
            for dy in range(kh) for dx in range(kw)]
    if Kp > K:   # fold the K zero-pad into the concat (no extra full-slab copy)
        taps.append(jnp.zeros((N, H, W, Kp - K), jnp.bfloat16))
    patches = jnp.concatenate(taps, axis=-1).reshape(M, Kp)
    if Mp > M:   # rare fallback path; the common path keeps Mp == M (no copy)
        patches = jnp.pad(patches, ((0, Mp - M), (0, 0)))

    # Weight (Cout,Cin,kh,kw) -> (kh,kw,Cin,Cout) -> (K,Cout), matching the
    # (dy, dx, cin) column order of `patches`; zero-pad to (Kp, Cp), cast bf16.
    w_mat = jnp.transpose(weight_oihw, (2, 3, 1, 0)).reshape(K, Cout)
    w_mat = jnp.pad(w_mat.astype(jnp.bfloat16), ((0, Kp - K), (0, Cp - Cout)))

    vmem_limit = 32 * 1024 * 1024   # safe on all generations (v7x scoped default);
                                    # can be raised toward 64 MiB on v5e/v6e for
                                    # much larger TM / Kp working sets.

    # -------- pass 1: conv + ReLU (staged bf16) + per-core per-channel stats -----
    def run_pass1(single_buffer_weight):
        if single_buffer_weight:
            w_spec = pl.BlockSpec((Kp, Cp), lambda c, i: (0, 0),
                                  pipeline_mode=pl.Buffered(1))
        else:
            w_spec = pl.BlockSpec((Kp, Cp), lambda c, i: (0, 0))
        return pl.pallas_call(
            _conv_relu_stats_kernel,
            out_shape=(jax.ShapeDtypeStruct((Mp, Cp), jnp.bfloat16),
                       jax.ShapeDtypeStruct((nc, 8, Cp), jnp.float32)),
            grid=(nc, steps),
            in_specs=[
                pl.BlockSpec((TM, Kp), lambda c, i: (c * steps + i, 0)),  # patches
                w_spec,                                                   # weight
            ],
            out_specs=(
                pl.BlockSpec((TM, Cp), lambda c, i: (c * steps + i, 0)),  # staged y
                pl.BlockSpec((None, 8, Cp), lambda c, i: (c, 0, 0)),      # per-core
            ),
            compiler_params=pltpu.CompilerParams(
                dimension_semantics=("parallel", "arbitrary"),
                vmem_limit_bytes=vmem_limit),
        )(patches, w_mat)

    try:
        # Grid-invariant weight -> single buffer (VMEM headroom under v7x's 64 MiB).
        y_flat, stats = run_pass1(True)
    except Exception:
        # JAX/Mosaic build without pipeline_mode support: default double buffering.
        y_flat, stats = run_pass1(False)

    # Fold BatchNorm (biased batch stats over the true M rows) into scale/shift;
    # padded rows/channels contribute zeros so dividing by M stays exact.
    ysum = jnp.sum(stats[:, 0, :], axis=0)           # reduce per-core partials
    ysq = jnp.sum(stats[:, 1, :], axis=0)
    mean = ysum / M
    var = jnp.maximum(ysq / M - mean * mean, 0.0)
    inv = jax.lax.rsqrt(var + eps)
    gamma_p = jnp.pad(gamma.astype(jnp.float32), (0, Cp - Cout))
    beta_p = jnp.pad(beta.astype(jnp.float32), (0, Cp - Cout))
    scale = (gamma_p * inv).reshape(1, Cp)
    shift = (beta_p - mean * gamma_p * inv).reshape(1, Cp)

    # ------------- pass 2: elementwise scale/shift over the staged y -------------
    out_flat = pl.pallas_call(
        _bn_apply_kernel,
        out_shape=jax.ShapeDtypeStruct((Mp, Cp), jnp.float32),
        grid=(num_tiles,),
        in_specs=[
            pl.BlockSpec((TM, Cp), lambda i: (i, 0)),   # staged relu(conv)
            pl.BlockSpec((1, Cp), lambda i: (0, 0)),    # scale (invariant)
            pl.BlockSpec((1, Cp), lambda i: (0, 0)),    # shift (invariant)
        ],
        out_specs=pl.BlockSpec((TM, Cp), lambda i: (i, 0)),
        compiler_params=pltpu.CompilerParams(
            dimension_semantics=("parallel",),          # megacore-shardable
            vmem_limit_bytes=vmem_limit),
    )(y_flat, scale, shift)

    # TODO(synk): the slice + reshape + transpose back to NCHW below is an extra XLA
    # round trip over the output; returning NHWC (and/or bf16) would remove it when
    # the consumer allows — kept to match the module's NCHW f32 semantics.
    out_nhwc = out_flat[:M, :Cout].reshape(N, H, W, Cout)
    return jnp.transpose(out_nhwc, (0, 3, 1, 2))
    # TODO(synk): BatchNorm2d running_mean/running_var update (stateful module side
    # effect) is not part of the returned tensor and is not reproduced.


def _reference(x_nchw, weight_oihw, gamma, beta, kernel_size, eps=1e-5):
    """Pure-JAX f32 reference of the PyTorch forward (training-mode BatchNorm)."""
    left, right, top, bottom = _conv_padding(kernel_size)
    xpad = jnp.pad(x_nchw, ((0, 0), (0, 0), (top, bottom), (left, right)))
    y = jax.lax.conv_general_dilated(
        xpad, weight_oihw, window_strides=(1, 1), padding="VALID",
        dimension_numbers=("NCHW", "OIHW", "NCHW"))
    y = jnp.maximum(y, 0.0)
    mean = jnp.mean(y, axis=(0, 2, 3), keepdims=True)
    var = jnp.mean((y - mean) ** 2, axis=(0, 2, 3), keepdims=True)
    return (y - mean) / jnp.sqrt(var + eps) * gamma.reshape(1, -1, 1, 1) \
        + beta.reshape(1, -1, 1, 1)


if __name__ == "__main__":
    key = jax.random.PRNGKey(0)
    k1, k2 = jax.random.split(key)

    N, Cin, H, W = 2, 4, 16, 16
    Cout = 8
    kernel_size = (3, 3)

    x = jax.random.normal(k1, (N, Cin, H, W), dtype=jnp.float32)
    # Conv2d(bias=False) weight; nn.BatchNorm2d defaults: gamma=1, beta=0.
    weight = 0.1 * jax.random.normal(k2, (Cout, Cin, *kernel_size), dtype=jnp.float32)
    gamma = jnp.ones((Cout,), dtype=jnp.float32)
    beta = jnp.zeros((Cout,), dtype=jnp.float32)

    # block_m=256 -> 2 M-tiles, exercising the per-core stats path (pass-1 grid
    # (2, 1)) and the cross-tile reduction + partial-sum fold.
    out = basic_conv2d(x, weight, gamma, beta, kernel_size, block_m=256)
    out = jax.block_until_ready(out)
    assert out.shape == (N, Cout, H, W), out.shape

    # Check against a reference fed the same bf16-quantized MXU operands; the
    # residual is the bf16 staging of relu(conv) between the two passes.
    ref_q = _reference(
        x.astype(jnp.bfloat16).astype(jnp.float32),
        weight.astype(jnp.bfloat16).astype(jnp.float32),
        gamma, beta, kernel_size)
    err_q = float(jnp.max(jnp.abs(out - ref_q)))
    assert jnp.allclose(out, ref_q, atol=4e-2, rtol=4e-2), err_q

    # Looser check against exact f32 module semantics (difference = bf16 operand
    # quantization of the MXU matmul + bf16 activation staging).
    ref = _reference(x, weight, gamma, beta, kernel_size)
    err = float(jnp.max(jnp.abs(out - ref)))
    assert jnp.allclose(out, ref, atol=8e-2, rtol=8e-2), err

    print("KERNEL_OK")
</pallas_src>

<mosaic_0001>
module attributes {stable_mosaic.version = 11 : i64} {
  func.func @_conv_relu_stats_kernel(%arg0: i32, %arg1: i32, %arg2: memref<256x128xbf16, #tpu.memory_space<vmem>>, %arg3: memref<128x128xbf16, #tpu.memory_space<vmem>>, %arg4: memref<256x128xbf16, #tpu.memory_space<vmem>>, %arg5: memref<1x8x128xf32, #tpu.memory_space<vmem>>) attributes {dimension_semantics = [#tpu.dimension_semantics<parallel>, #tpu.dimension_semantics<arbitrary>], iteration_bounds = array<i64: 2, 1>, scalar_prefetch = 0 : i64, scratch_operands = 0 : i64, tpu.core_type = #tpu.core_type<tc>, window_params = [{transform_indices = @transform_0, window_bounds = array<i64: 256, 128>}, {pipeline_mode = #tpu.pipeline_mode<synchronous>, transform_indices = @transform_1, window_bounds = array<i64: 128, 128>}, {transform_indices = @transform_2, window_bounds = array<i64: 256, 128>}, {transform_indices = @transform_3, window_bounds = array<i64: 1, 8, 128>}]} {
    %c0_i32 = arith.constant 0 : i32
    %0 = arith.cmpi eq, %arg1, %c0_i32 : i32
    %1 = arith.extui %0 : i1 to i32
    %c0_i32_0 = arith.constant 0 : i32
    %2 = arith.cmpi ne, %1, %c0_i32_0 : i32
    scf.if %2 {
      %cst_20 = arith.constant 0.000000e+00 : f32
      %27 = vector.broadcast %cst_20 : f32 to vector<8x128xf32>
      %c0_21 = arith.constant 0 : index
      %c0_22 = arith.constant 0 : index
      %c0_23 = arith.constant 0 : index
      %28 = vector.load %arg5[%c0_21, %c0_22, %c0_23] : memref<1x8x128xf32, #tpu.memory_space<vmem>>, vector<1x8x128xf32>
      %29 = vector.shape_cast %28 : vector<1x8x128xf32> to vector<8x128xf32>
      %30 = vector.shape_cast %27 : vector<8x128xf32> to vector<1x8x128xf32>
      tpu.vector_store %arg5[%c0_21, %c0_22, %c0_23], %30 {strides = array<i32>} : memref<1x8x128xf32, #tpu.memory_space<vmem>>, vector<1x8x128xf32>,
    } else {
    }
    %c0 = arith.constant 0 : index
    %c0_1 = arith.constant 0 : index
    %3 = vector.load %arg2[%c0, %c0_1] : memref<256x128xbf16, #tpu.memory_space<vmem>>, vector<256x128xbf16>
    %c0_2 = arith.constant 0 : index
    %c0_3 = arith.constant 0 : index
    %4 = vector.load %arg3[%c0_2, %c0_3] : memref<128x128xbf16, #tpu.memory_space<vmem>>, vector<128x128xbf16>
    %cst = arith.constant dense<0.000000e+00> : vector<256x128xf32>
    %5 = tpu.matmul %3, %4, %cst {dimension_numbers = #tpu.dot_dimension_numbers<[1], [0], [0], [1], [0, 0, 1, 1], [], []>} : vector<256x128xbf16>, vector<128x128xbf16>, vector<256x128xf32> -> vector<256x128xf32>
    %cst_4 = arith.constant 0.000000e+00 : f32
    %6 = vector.broadcast %cst_4 : f32 to vector<256x128xf32>
    %7 = arith.maximumf %5, %6 : vector<256x128xf32>
    %8 = arith.truncf %7 : vector<256x128xf32> to vector<256x128xbf16>
    %c0_5 = arith.constant 0 : index
    %c0_6 = arith.constant 0 : index
    %9 = vector.load %arg4[%c0_5, %c0_6] : memref<256x128xbf16, #tpu.memory_space<vmem>>, vector<256x128xbf16>
    tpu.vector_store %arg4[%c0_5, %c0_6], %8 {strides = array<i32>} : memref<256x128xbf16, #tpu.memory_space<vmem>>, vector<256x128xbf16>,
    %c0_7 = arith.constant 0 : index
    %c0_8 = arith.constant 0 : index
    %c0_9 = arith.constant 0 : index
    %10 = vector.load %arg5[%c0_7, %c0_8, %c0_9] : memref<1x8x128xf32, #tpu.memory_space<vmem>>, vector<1x1x128xf32>
    %11 = vector.shape_cast %10 : vector<1x1x128xf32> to vector<1x128xf32>
    %cst_10 = arith.constant dense<0.000000e+00> : vector<128xf32>
    %12 = vector.multi_reduction <add>, %7, %cst_10 [0] : vector<256x128xf32> to vector<128xf32>
    %13 = vector.shape_cast %12 : vector<128xf32> to vector<1x128xf32>
    %14 = arith.addf %11, %13 : vector<1x128xf32>
    %c0_11 = arith.constant 0 : index
    %c0_12 = arith.constant 0 : index
    %c0_13 = arith.constant 0 : index
    %15 = vector.load %arg5[%c0_11, %c0_12, %c0_13] : memref<1x8x128xf32, #tpu.memory_space<vmem>>, vector<1x1x128xf32>
    %16 = vector.shape_cast %15 : vector<1x1x128xf32> to vector<1x128xf32>
    %17 = vector.shape_cast %14 : vector<1x128xf32> to vector<1x1x128xf32>
    tpu.vector_store %arg5[%c0_11, %c0_12, %c0_13], %17 {strides = array<i32>} : memref<1x8x128xf32, #tpu.memory_space<vmem>>, vector<1x1x128xf32>,
    %c0_14 = arith.constant 0 : index
    %c1 = arith.constant 1 : index
    %c0_15 = arith.constant 0 : index
    %18 = vector.load %arg5[%c0_14, %c1, %c0_15] : memref<1x8x128xf32, #tpu.memory_space<vmem>>, vector<1x1x128xf32>
    %19 = vector.shape_cast %18 : vector<1x1x128xf32> to vector<1x128xf32>
    %20 = arith.mulf %7, %7 : vector<256x128xf32>
    %cst_16 = arith.constant dense<0.000000e+00> : vector<128xf32>
    %21 = vector.multi_reduction <add>, %20, %cst_16 [0] : vector<256x128xf32> to vector<128xf32>
    %22 = vector.shape_cast %21 : vector<128xf32> to vector<1x128xf32>
    %23 = arith.addf %19, %22 : vector<1x128xf32>
    %c0_17 = arith.constant 0 : index
    %c1_18 = arith.constant 1 : index
    %c0_19 = arith.constant 0 : index
    %24 = vector.load %arg5[%c0_17, %c1_18, %c0_19] : memref<1x8x128xf32, #tpu.memory_space<vmem>>, vector<1x1x128xf32>
    %25 = vector.shape_cast %24 : vector<1x1x128xf32> to vector<1x128xf32>
    %26 = vector.shape_cast %23 : vector<1x128xf32> to vector<1x1x128xf32>
    tpu.vector_store %arg5[%c0_17, %c1_18, %c0_19], %26 {strides = array<i32>} : memref<1x8x128xf32, #tpu.memory_space<vmem>>, vector<1x1x128xf32>,
    return
  }
  func.func @transform_0(%arg0: i32, %arg1: i32) -> (i32, i32) {
    %c1_i32 = arith.constant 1 : i32
    %0 = arith.muli %arg0, %c1_i32 : i32
    %1 = arith.addi %0, %arg1 : i32
    %c0_i32 = arith.constant 0 : i32
    %c0_i32_0 = arith.constant 0 : i32
    return %1, %c0_i32 : i32, i32
  }
  func.func @transform_1(%arg0: i32, %arg1: i32) -> (i32, i32) {
    %c0_i32 = arith.constant 0 : i32
    %c0_i32_0 = arith.constant 0 : i32
    %c0_i32_1 = arith.constant 0 : i32
    return %c0_i32, %c0_i32_0 : i32, i32
  }
  func.func @transform_2(%arg0: i32, %arg1: i32) -> (i32, i32) {
    %c1_i32 = arith.constant 1 : i32
    %0 = arith.muli %arg0, %c1_i32 : i32
    %1 = arith.addi %0, %arg1 : i32
    %c0_i32 = arith.constant 0 : i32
    %c0_i32_0 = arith.constant 0 : i32
    return %1, %c0_i32 : i32, i32
  }
  func.func @transform_3(%arg0: i32, %arg1: i32) -> (i32, i32, i32) {
    %c0_i32 = arith.constant 0 : i32
    %c0_i32_0 = arith.constant 0 : i32
    %c0_i32_1 = arith.constant 0 : i32
    return %arg0, %c0_i32, %c0_i32_0 : i32, i32, i32
  }
}

module attributes {stable_mosaic.version = 11 : i64} {
  func.func @_conv_relu_stats_kernel(%arg0: i32, %arg1: i32, %arg2: memref<256x128xbf16, #tpu.memory_space<vmem>>, %arg3: memref<128x128xbf16, #tpu.memory_space<vmem>>, %arg4: memref<256x128xbf16, #tpu.memory_space<vmem>>, %arg5: memref<1x8x128xf32, #tpu.memory_space<vmem>>) attributes {dimension_semantics = [#tpu.dimension_semantics<parallel>, #tpu.dimension_semantics<arbitrary>], iteration_bounds = array<i64: 2, 1>, scalar_prefetch = 0 : i64, scratch_operands = 0 : i64, tpu.core_type = #tpu.core_type<tc>, window_params = [{transform_indices = @transform_0, window_bounds = array<i64: 256, 128>}, {pipeline_mode = #tpu.pipeline_mode<synchronous>, transform_indices = @transform_1, window_bounds = array<i64: 128, 128>}, {transform_indices = @transform_2, window_bounds = array<i64: 256, 128>}, {transform_indices = @transform_3, window_bounds = array<i64: 1, 8, 128>}]} {
    %c0_i32 = arith.constant 0 : i32
    %0 = arith.cmpi eq, %arg1, %c0_i32 : i32
    %1 = arith.extui %0 : i1 to i32
    %c0_i32_0 = arith.constant 0 : i32
    %2 = arith.cmpi ne, %1, %c0_i32_0 : i32
    scf.if %2 {
      %cst_20 = arith.constant 0.000000e+00 : f32
      %27 = vector.broadcast %cst_20 : f32 to vector<8x128xf32>
      %c0_21 = arith.constant 0 : index
      %c0_22 = arith.constant 0 : index
      %c0_23 = arith.constant 0 : index
      %28 = vector.load %arg5[%c0_21, %c0_22, %c0_23] : memref<1x8x128xf32, #tpu.memory_space<vmem>>, vector<1x8x128xf32>
      %29 = vector.shape_cast %28 : vector<1x8x128xf32> to vector<8x128xf32>
      %30 = vector.shape_cast %27 : vector<8x128xf32> to vector<1x8x128xf32>
      tpu.vector_store %arg5[%c0_21, %c0_22, %c0_23], %30 {strides = array<i32>} : memref<1x8x128xf32, #tpu.memory_space<vmem>>, vector<1x8x128xf32>,
    } else {
    }
    %c0 = arith.constant 0 : index
    %c0_1 = arith.constant 0 : index
    %3 = vector.load %arg2[%c0, %c0_1] : memref<256x128xbf16, #tpu.memory_space<vmem>>, vector<256x128xbf16>
    %c0_2 = arith.constant 0 : index
    %c0_3 = arith.constant 0 : index
    %4 = vector.load %arg3[%c0_2, %c0_3] : memref<128x128xbf16, #tpu.memory_space<vmem>>, vector<128x128xbf16>
    %cst = arith.constant dense<0.000000e+00> : vector<256x128xf32>
    %5 = tpu.matmul %3, %4, %cst {dimension_numbers = #tpu.dot_dimension_numbers<[1], [0], [0], [1], [0, 0, 1, 1], [], []>} : vector<256x128xbf16>, vector<128x128xbf16>, vector<256x128xf32> -> vector<256x128xf32>
    %cst_4 = arith.constant 0.000000e+00 : f32
    %6 = vector.broadcast %cst_4 : f32 to vector<256x128xf32>
    %7 = arith.maximumf %5, %6 : vector<256x128xf32>
    %8 = arith.truncf %7 : vector<256x128xf32> to vector<256x128xbf16>
    %c0_5 = arith.constant 0 : index
    %c0_6 = arith.constant 0 : index
    %9 = vector.load %arg4[%c0_5, %c0_6] : memref<256x128xbf16, #tpu.memory_space<vmem>>, vector<256x128xbf16>
    tpu.vector_store %arg4[%c0_5, %c0_6], %8 {strides = array<i32>} : memref<256x128xbf16, #tpu.memory_space<vmem>>, vector<256x128xbf16>,
    %c0_7 = arith.constant 0 : index
    %c0_8 = arith.constant 0 : index
    %c0_9 = arith.constant 0 : index
    %10 = vector.load %arg5[%c0_7, %c0_8, %c0_9] : memref<1x8x128xf32, #tpu.memory_space<vmem>>, vector<1x1x128xf32>
    %11 = vector.shape_cast %10 : vector<1x1x128xf32> to vector<1x128xf32>
    %cst_10 = arith.constant dense<0.000000e+00> : vector<128xf32>
    %12 = vector.multi_reduction <add>, %7, %cst_10 [0] : vector<256x128xf32> to vector<128xf32>
    %13 = vector.shape_cast %12 : vector<128xf32> to vector<1x128xf32>
    %14 = arith.addf %11, %13 : vector<1x128xf32>
    %c0_11 = arith.constant 0 : index
    %c0_12 = arith.constant 0 : index
    %c0_13 = arith.constant 0 : index
    %15 = vector.load %arg5[%c0_11, %c0_12, %c0_13] : memref<1x8x128xf32, #tpu.memory_space<vmem>>, vector<1x1x128xf32>
    %16 = vector.shape_cast %15 : vector<1x1x128xf32> to vector<1x128xf32>
    %17 = vector.shape_cast %14 : vector<1x128xf32> to vector<1x1x128xf32>
    tpu.vector_store %arg5[%c0_11, %c0_12, %c0_13], %17 {strides = array<i32>} : memref<1x8x128xf32, #tpu.memory_space<vmem>>, vector<1x1x128xf32>,
    %c0_14 = arith.constant 0 : index
    %c1 = arith.constant 1 : index
    %c0_15 = arith.constant 0 : index
    %18 = vector.load %arg5[%c0_14, %c1, %c0_15] : memref<1x8x128xf32, #tpu.memory_space<vmem>>, vector<1x1x128xf32>
    %19 = vector.shape_cast %18 : vector<1x1x128xf32> to vector<1x128xf32>
    %20 = arith.mulf %7, %7 : vector<256x128xf32>
    %cst_16 = arith.constant dense<0.000000e+00> : vector<128xf32>
    %21 = vector.multi_reduction <add>, %20, %cst_16 [0] : vector<256x128xf32> to vector<128xf32>
    %22 = vector.shape_cast %21 : vector<128xf32> to vector<1x128xf32>
    %23 = arith.addf %19, %22 : vector<1x128xf32>
    %c0_17 = arith.constant 0 : index
    %c1_18 = arith.constant 1 : index
    %c0_19 = arith.constant 0 : index
    %24 = vector.load %arg5[%c0_17, %c1_18, %c0_19] : memref<1x8x128xf32, #tpu.memory_space<vmem>>, vector<1x1x128xf32>
    %25 = vector.shape_cast %24 : vector<1x1x128xf32> to vector<1x128xf32>
    %26 = vector.shape_cast %23 : vector<1x128xf32> to vector<1x1x128xf32>
    tpu.vector_store %arg5[%c0_17, %c1_18, %c0_19], %26 {strides = array<i32>} : memref<1x8x128xf32, #tpu.memory_space<vmem>>, vector<1x1x128xf32>,
    return
  }
  func.func @transform_0(%arg0: i32, %arg1: i32) -> (i32, i32) {
    %c1_i32 = arith.constant 1 : i32
    %0 = arith.muli %arg0, %c1_i32 : i32
    %1 = arith.addi %0, %arg1 : i32
    %c0_i32 = arith.constant 0 : i32
    %c0_i32_0 = arith.constant 0 : i32
    return %1, %c0_i32 : i32, i32
  }
  func.func @transform_1(%arg0: i32, %arg1: i32) -> (i32, i32) {
    %c0_i32 = arith.constant 0 : i32
    %c0_i32_0 = arith.constant 0 : i32
    %c0_i32_1 = arith.constant 0 : i32
    return %c0_i32, %c0_i32_0 : i32, i32
  }
  func.func @transform_2(%arg0: i32, %arg1: i32) -> (i32, i32) {
    %c1_i32 = arith.constant 1 : i32
    %0 = arith.muli %arg0, %c1_i32 : i32
    %1 = arith.addi %0, %arg1 : i32
    %c0_i32 = arith.constant 0 : i32
    %c0_i32_0 = arith.constant 0 : i32
    return %1, %c0_i32 : i32, i32
  }
  func.func @transform_3(%arg0: i32, %arg1: i32) -> (i32, i32, i32) {
    %c0_i32 = arith.constant 0 : i32
    %c0_i32_0 = arith.constant 0 : i32
    %c0_i32_1 = arith.constant 0 : i32
    return %arg0, %c0_i32, %c0_i32_0 : i32, i32, i32
  }
}

</mosaic_0001>

<bundles_post_ra>
// kernel: tpu_custom_call.1
= control target key start
LH: loop header
LB: loop body
LE: loop exit
PB: predicated region body
PF: predicated region fallthrough
CT: control target
= control target key end

     0   :  { %9 = vsyncpa [#allocation3], 0  ;;  %s2065_s0 = inlined_call_operand.hbm [shape: bf16[512,128], index: 0, kind: input, shape index: {}]   ;;  %s2066_s1 = inlined_call_operand.hbm [shape: bf16[128,128], index: 1, kind: input, shape index: {}]   ;;  %s2067_s2 = inlined_call_operand.hbm [shape: bf16[512,128], index: 2, kind: output, shape index: {0}]   ;;  %s2068_s3 = inlined_call_operand.hbm [shape: f32[2,8,128], index: 3, kind: output, shape index: {1}]  }
   0x1   :  { %11 = vsyncpa [#allocation3 + $0x1], 0 }
   0x2   :  { %12 = vsyncpa [#allocation6], 0 }
   0x3   :  { %13 = vsyncpa [#allocation4], 0 }
   0x4   :  { %15 = vsyncpa [#allocation4 + $0x1], 0 }
   0x5   :  { %16 = vsyncpa [#allocation9], 0 }
   0x6   :  { %18 = vsyncpa [#allocation9 + $0x1], 0  ;;  %s1664_s12 = smov 0   ;;  %s1666_s13 = smov 0  }
   0x7   :  { %s1668_s14 = smov 0   ;;  %s1670_s15 = smov 0  }
   0x8   :  { %s1672_s16 = smov 0   ;;  %s1674_s17 = smov 0  }
   0x9 LB: > { %s1057_s18 = sadd.s32 4294967295, %s1633_s17   ;;  %s1058_s19 = sadd.s32 4294967294, %s1633_s17   ;;  %s1633_s17 = sphi %s1674_s17, %s24_s17   ;;  %s1629_s16 = sphi %s1672_s16, %s2092_s16   ;;  %s1625_s15 = sphi %s1670_s15, %s2091_s15   ;;  %s1621_s14 = sphi %s1668_s14, %s2090_s14   ;;  %s1617_s13 = sphi %s1666_s13, %s2089_s13   ;;  %s1613_s12 = sphi %s1664_s12, %s2088_s12  }
   0xa   : > { %p58_p0 = scmp.ne.s32.totalorder %s1617_s13, %s1613_s12  ;;  %p1698_p1 = scmp.eq.s32.totalorder %s1057_s18, 0 }
   0xb   : > { %p1702_p2 = scmp.eq.s32.totalorder %s1057_s18, 1  ;;  %p111_p3 = scmp.eq.s32.totalorder %s1058_s19, 1 }
   0xc   : > { %s2073_s20 = scalar_select %p1698_p1, 1, 0 }
   0xd   : > { %s2074_s21 = scalar_select %p1702_p2, 1, 0 }
   0xe   : > { %p1708_p4 = por %p1698_p1, %p58_p0  ;;  %p1059_p5 = scmp.ge.s32.totalorder %s1633_s17, 1 }
   0xf   : > { %p1713_p6 = por %p111_p3, %p58_p0  ;;  %p144_p7 = scmp.lt.s32.totalorder %s1633_s17, 3 }
  0x10   : > { %s2075_s22 = scalar_select %p1708_p4, 1, 0 }
  0x11   : > { %s2076_s23 = scalar_select %p1713_p6, 1, 0 }
  0x12   : > { %p1718_p8 = pnand %p1059_p5, %p144_p7  ;;  %s1635_s25 = smov [#allocation5]  }
  0x13   : > { %s156_s26 = sshll.u32 %s1635_s25, 4  ;;  %s36_s28 = sadd.s32 1, %s1629_s16  ;;  %s157_s26 = int_to_ptr.vmem [resolvable:$true] %s156_s26 }
  0x14   : > { %s2077_s24 = scalar_select %p1718_p8, 1, 0 }
  0x15   : > { %p1360_p9 = pneg %p1718_p8  ;;  %s1457_s4 = scalar_lea.hbm %s2066_s1, 1024 }
  0x16   : > { %p1458_p12 = scmp.ne.s32.totalorder %s2066_s1, %s1457_s4  ;;  %p1464_p5 = scmp.lt.u32.totalorder %s1457_s4, %s2066_s1 }
  0x17   : > { %p1727_p11 = pnand %p1360_p9, %p1698_p1 }
  0x19   : > { %p1459_p13 = pneg %p1727_p11 }
  0x1b   : > { %p1460_p0 = pnand %p1459_p13, %p1458_p12 }
  0x1d   : > { %p1461_p3 = pneg %p1460_p0 }
  0x1f   : > { %p1466_p7 = pnand %p1464_p5, %p1461_p3 }
  0x21   : > { %1469 = shalt.err (!%p1466_p7)
}
  0x22   : > { %s1470_s9 = scalar_lea.vmem %s157_s26, 1024  ;;  %p1478_p1 = scmp.lt.s32.totalorder %s157_s26, %s157_s26 }
  0x23   : > { %p1471_p9 = scmp.ne.s32.totalorder %s157_s26, %s1470_s9  ;;  %p1479_p4 = scmp.lt.s32.totalorder %s1470_s9, %s1470_s9 }
  0x25   : > { %p1473_p10 = pnand %p1471_p9, %p1459_p13  ;;  %p1480_p8 = por %p1479_p4, %p1478_p1 }
  0x27   : > { %p1474_p6 = pneg %p1473_p10 }
  0x29   : > { %p1481_p2 = pnand %p1480_p8, %p1474_p6 }
  0x2b   : > { %1484 = shalt.err (!%p1481_p2)
}
  0x2c   : > { %s1636_s10 = smov 64   ;;  %s1637_s11 = smov 4  }
  0x2d   : > { %1363 = dma.hbm_to_vmem [thread:$0]  (!%p1727_p11), %s2066_s1, 1024, %s157_s26, [#allocation6], %s1636_s10, %s1636_s10, %s1637_s11  }
  0x2e   : > { %p38_p1 = scmp.ge.s32.totalorder %s36_s28, 2  ;;  %s45_s25 = sadd.s32 1, %s1621_s14 }
  0x2f   : > { %p52_p2 = scmp.ne.s32.totalorder %s1621_s14, %s1617_s13  ;;  %p53_p4 = scmp.eq.s32.totalorder %s1633_s17, 0 }
  0x30   : > { %s2094_s28 = smov (%p38_p1, %s36_s28), 0  ;;  %p2080_p8 = scmp.ne.s32.totalorder %s2074_s21, 0 }
  0x31   : > { %p1757_p6 = por %p53_p4, %p52_p2  ;;  %s42_s30 = ssub.s32 %s1629_s16, %s2094_s28 }
  0x32   : > { %p1763_p10 = por %p2080_p8, %p52_p2  ;;  %p1376_p12 = scmp.lt.s32.totalorder %s1633_s17, 2 }
  0x33   : > { %p43_p11 = scmp.eq.s32.totalorder %s42_s30, 0  ;;  %s170_s26 = sand.u32 1, %s1621_s14  }
  0x34   : > { %s1062_s4 = sshll.u32 %s170_s26, 7  ;;  %s1133_s6 = sshll.u32 %s1629_s16, 11 }
  0x35   : > { %s1772_s5 = scalar_select %p43_p11, %s1621_s14, %s45_s25  }
  0x36   : > { %s1778_s9 = scalar_lea.hbm %s2065_s0, %s1133_s6  ;;  %s174_s21 = scalar_lea.vmem [#allocation2], %s1062_s4 }
  0x37   : > { %s182_s18 = sshll.u32 %s174_s21, 4  ;;  %p1784_p13 = pnand %p1376_p12, %p1757_p6  ;;  %s1780_s18 = int_to_ptr.vmem [resolvable:$true] %s182_s18 }
  0x38   : > { %s1788_s25 = scalar_lea.sflag [#allocation3], %s170_s26  ;;  %s1485_s30 = scalar_lea.hbm %s1778_s9, 2048 }
  0x39   : > { %p1486_p0 = scmp.ne.s32.totalorder %s1778_s9, %s1485_s30  ;;  %p1487_p3 = pneg %p1784_p13 }
  0x3a   : > { %s1490_s29 = scalar_lea.hbm %s2065_s0, 4096  ;;  %p1491_p9 = scmp.lt.u32.totalorder %s1778_s9, %s2065_s0 }
  0x3b   : > { %p1488_p5 = pnand %p1487_p3, %p1486_p0  ;;  %p1492_p1 = scmp.lt.u32.totalorder %s1490_s29, %s1485_s30 }
  0x3c   : > { %p1494_p4 = scmp.lt.u32.totalorder %s1485_s30, %s1778_s9 }
  0x3d   : > { %p1489_p7 = pneg %p1488_p5  ;;  %p1493_p2 = por %p1492_p1, %p1491_p9 }
  0x3f   : > { %p1495_p6 = por %p1494_p4, %p1493_p2 }
  0x41   : > { %p1496_p8 = pnand %p1495_p6, %p1489_p7 }
  0x43   : > { %1499 = shalt.err (!%p1496_p8)
}
  0x44   : > { %s1500_s26 = scalar_lea.vmem %s1780_s18, 2048  ;;  %s1638_s21 = smov [#allocation2]  }
  0x45   : > { %p1501_p12 = scmp.ne.s32.totalorder %s1780_s18, %s1500_s26  ;;  %s1505_s4 = sshll.u32 %s1638_s21, 4  ;;  %s1506_s4 = int_to_ptr.vmem [resolvable:$false] %s1505_s4 }
  0x46   : > { %s1507_s6 = scalar_lea.vmem %s1506_s4, 4096  ;;  %p1508_p5 = scmp.lt.s32.totalorder %s1780_s18, %s1506_s4 }
  0x47   : > { %p1503_p11 = pnand %p1501_p12, %p1487_p3  ;;  %p1509_p9 = scmp.lt.s32.totalorder %s1507_s6, %s1500_s26 }
  0x49   : > { %p1504_p0 = pneg %p1503_p11  ;;  %p1510_p1 = por %p1509_p9, %p1508_p5 }
  0x4b   : > { %p1511_p2 = pnand %p1510_p1, %p1504_p0 }
  0x4d   : > { %1514 = shalt.err (!%p1511_p2)
}
  0x4e   : > { %1367 = dma.hbm_to_vmem [thread:$0]  (!%p1784_p13), %s1778_s9, 2048, %s1780_s18, %s1788_s25, %s1636_s10, %s1636_s10, %s1637_s11  }
  0x4f   : > { %p2083_p3 = scmp.ne.s32.totalorder %s2077_s24, 0 }
  0x50   : > { %s1822_s30 = sand.u32 (!%p2083_p3), 1, %s1617_s13   ;;  %p2084_p7 = scmp.ne.s32.totalorder (!%p2083_p3), %s2075_s22, 0 }
  0x51   : > { %194 = sbr.rel (%p2083_p3) target bundleno = 445 (0x1bd), region = 28  ;;  %s1066_s29 = sshll.u32 (!%p2083_p3), %s1822_s30, 7 }
  0x52   : > { %s197_s7 = scalar_lea.sflag (!%p2083_p3), [#allocation3], %s1822_s30  ;;  %s1828_s19 = scalar_lea.vmem (!%p2083_p3), [#allocation2], %s1066_s29 }
  0x58   : > { %1596 = dma.done.wait (%p2084_p7), %s197_s7, 2048  }
  0x59   : > { %1598 = vsyncadd (%p2084_p7), %s197_s7, 4294965248  ;;  %p2085_p13 = scmp.ne.s32.totalorder %s2073_s20, 0 }
  0x5b   : > { %1600 = dma.done.wait (%p2085_p13), [#allocation6], 1024  }
  0x5c   : > { %1602 = vsyncadd (%p2085_p13), [#allocation6], 4294966272  ;;  %v1433_v0 = vld [vmem:[#allocation5] sm:$0xff]   ;;  %v1434_v1 = vld [vmem:[#allocation5 + $0x8] sm:$0xff]   ;;  %s1069_s20 = sshll.u32 %s1822_s30, 3  ;;  %v1639_v24 = vmov 0.0  }
  0x5d   : > { %1286 = vmatprep.subr.bf16.mxu0 %v1433_v0  ;;  %1334 = vmatprep.subr.bf16.mxu1 %v1433_v0  ;;  %v1435_v2 = vld [vmem:[#allocation5 + $0x10] sm:$0xff]   ;;  %v1436_v3 = vld [vmem:[#allocation5 + $0x18] sm:$0xff]   ;;  %v1441_v4 = vld [vmem:[%s1828_s19] sm:$0xff]   ;;  %s1855_s22 = scalar_lea.vmem [#allocation8], %s1069_s20  ;;  %s1872_s24 = scalar_lea.vmem [#allocation7], %s1066_s29 }
  0x5e   : > { %1287 = vmatpush3.bf16.msra.mxu0 %v1433_v0  ;;  %1342 = vmatpush3.bf16.msra.mxu1 %v1433_v0  ;;  %v1437_v5 = vld [vmem:[#allocation5 + $0x20] sm:$0xff]   ;;  %v1438_v6 = vld [vmem:[#allocation5 + $0x28] sm:$0xff]   ;;  %v1439_v8 = vld [vmem:[#allocation5 + $0x30] sm:$0xff]   ;;  %241 = vst [vmem:[%s1855_s22] sm:$0xff] %v1639_v24  ;;  %s1166_s10 = sshll.u32 %s1625_s15, 11  ;;  %s919_s11 = sshll.u32 %s1872_s24, 4  ;;  %s1930_s11 = int_to_ptr.vmem [resolvable:$true] %s919_s11 }
  0x5f   : > { %1288 = vmatprep.subr.bf16.mxu0 %v1434_v1  ;;  %1335 = vmatprep.subr.bf16.mxu1 %v1434_v1  ;;  %v1449_v7 = vld [vmem:[%s1828_s19 + $0x40] sm:$0xff]   ;;  %v1440_v9 = vld [vmem:[#allocation5 + $0x38] sm:$0xff]   ;;  %v1442_v10 = vld [vmem:[%s1828_s19 + $0x8] sm:$0xff]   ;;  %s1928_s25 = scalar_lea.hbm %s2067_s2, %s1166_s10  ;;  %s900_s8 = scalar_lea.sflag [#allocation4], %s1822_s30 }
  0x60   : > { %1302 = vmatprep.mubr.bf16.mxu0 %v1441_v4  ;;  %1318 = vmatprep.mubr.bf16.mxu1 %v1449_v7  ;;  %v1450_v11 = vld [vmem:[%s1828_s19 + $0x48] sm:$0xff]   ;;  %v1443_v12 = vld [vmem:[%s1828_s19 + $0x10] sm:$0xff]   ;;  %v1444_v14 = vld [vmem:[%s1828_s19 + $0x18] sm:$0xff]   ;;  %s1515_s26 = scalar_lea.vmem %s1930_s11, 2048  ;;  %s1640_s21 = smov [#allocation7]  }
  0x61   : > { %v1451_v13 = vld [vmem:[%s1828_s19 + $0x50] sm:$0xff]   ;;  %v1452_v15 = vld [vmem:[%s1828_s19 + $0x58] sm:$0xff]   ;;  %v1445_v16 = vld [vmem:[%s1828_s19 + $0x20] sm:$0xff]   ;;  %p1516_p4 = scmp.ne.s32.totalorder %s1930_s11, %s1515_s26  ;;  %s1519_s4 = sshll.u32 %s1640_s21, 4  ;;  %s1520_s4 = int_to_ptr.vmem [resolvable:$false] %s1519_s4 }
  0x62   : > { %1289 = vmatpush3.bf16.msra.mxu0 %v1434_v1  ;;  %1343 = vmatpush3.bf16.msra.mxu1 %v1434_v1  ;;  %v1453_v17 = vld [vmem:[%s1828_s19 + $0x60] sm:$0xff]   ;;  %v1446_v18 = vld [vmem:[%s1828_s19 + $0x28] sm:$0xff]   ;;  %v1447_v20 = vld [vmem:[%s1828_s19 + $0x30] sm:$0xff]   ;;  %s1521_s6 = scalar_lea.vmem %s1520_s4, 4096  ;;  %p1522_p12 = scmp.lt.s32.totalorder %s1930_s11, %s1520_s4 }
  0x63   : > { %1290 = vmatprep.subr.bf16.mxu0 %v1435_v2  ;;  %1336 = vmatprep.subr.bf16.mxu1 %v1435_v2  ;;  %v1454_v19 = vld [vmem:[%s1828_s19 + $0x68] sm:$0xff]   ;;  %v1455_v21 = vld [vmem:[%s1828_s19 + $0x70] sm:$0xff]   ;;  %v1448_v22 = vld [vmem:[%s1828_s19 + $0x38] sm:$0xff]   ;;  %p1517_p6 = pnand %p1516_p4, %p1763_p10  ;;  %p1523_p11 = scmp.lt.s32.totalorder %s1521_s6, %s1515_s26 }
  0x64   : > { %v1456_v23 = vld [vmem:[%s1828_s19 + $0x78] sm:$0xff]  }
  0x65   : > { %p1518_p8 = pneg %p1517_p6  ;;  %p1524_p0 = por %p1523_p11, %p1522_p12 }
  0x66   : > { %1291 = vmatpush3.bf16.msra.mxu0 %v1435_v2  ;;  %1344 = vmatpush3.bf16.msra.mxu1 %v1435_v2 }
  0x67   : > { %1292 = vmatprep.subr.bf16.mxu0 %v1436_v3  ;;  %1337 = vmatprep.subr.bf16.mxu1 %v1436_v3  ;;  %p1525_p5 = pnand %p1524_p0, %p1518_p8 }
  0x6a   : > { %1293 = vmatpush3.bf16.msra.mxu0 %v1436_v3  ;;  %1345 = vmatpush3.bf16.msra.mxu1 %v1436_v3 }
  0x6b   : > { %1294 = vmatprep.subr.bf16.mxu0 %v1437_v5  ;;  %1338 = vmatprep.subr.bf16.mxu1 %v1437_v5 }
  0x6e   : > { %1295 = vmatpush3.bf16.msra.mxu0 %v1437_v5  ;;  %1346 = vmatpush3.bf16.msra.mxu1 %v1437_v5 }
  0x6f   : > { %1296 = vmatprep.subr.bf16.mxu0 %v1438_v6  ;;  %1339 = vmatprep.subr.bf16.mxu1 %v1438_v6 }
  0x72   : > { %1297 = vmatpush3.bf16.msra.mxu0 %v1438_v6  ;;  %1347 = vmatpush3.bf16.msra.mxu1 %v1438_v6 }
  0x73   : > { %1298 = vmatprep.subr.bf16.mxu0 %v1439_v8  ;;  %1340 = vmatprep.subr.bf16.mxu1 %v1439_v8 }
  0x76   : > { %1299 = vmatpush3.bf16.msra.mxu0 %v1439_v8  ;;  %1348 = vmatpush3.bf16.msra.mxu1 %v1439_v8 }
  0x77   : > { %1300 = vmatprep.subr.bf16.mxu0 %v1440_v9  ;;  %1341 = vmatprep.subr.bf16.mxu1 %v1440_v9 }
  0x7a   : > { %1301 = vmatpush3.bf16.msra.mxu0 %v1440_v9  ;;  %1349 = vmatpush3.bf16.msra.mxu1 %v1440_v9 }
  0x7d   : > { %1303 = vmatmul.mubr.bf16.vlgmr.msra.gmra.mrb[0].mxu0 %v1442_v10  ;;  %1319 = vmatmul.mubr.bf16.vlgmr.msra.gmra.mrb[0].mxu1 %v1450_v11 }
  0x7e   : > { %1306 = vmatprep.mubr.bf16.mxu0 %v1443_v12  ;;  %1322 = vmatprep.mubr.bf16.mxu1 %v1451_v13 }
  0x85   : > { %1307 = vmatmul.mubr.bf16.gmra.mrb[4].mxu0 %v1444_v14  ;;  %1323 = vmatmul.mubr.bf16.gmra.mrb[4].mxu1 %v1452_v15 }
  0x86   : > { %1310 = vmatprep.mubr.bf16.mxu0 %v1445_v16  ;;  %1326 = vmatprep.mubr.bf16.mxu1 %v1453_v17 }
  0x8d   : > { %1311 = vmatmul.mubr.bf16.gmra.mrb[8].mxu0 %v1446_v18  ;;  %1327 = vmatmul.mubr.bf16.gmra.mrb[8].mxu1 %v1454_v19 }
  0x8e   : > { %1314 = vmatprep.mubr.bf16.mxu0 %v1447_v20  ;;  %1330 = vmatprep.mubr.bf16.mxu1 %v1455_v21 }
  0x95   : > { %1315 = vmatmul.mubr.bf16.gmra.mrb[12].mxu0 %v1448_v22  ;;  %1331 = vmatmul.mubr.bf16.gmra.mrb[12].mxu1 %v1456_v23 }
 0x150   : > { %v1304_v25 = vpop.f32.mrb[0].mxu0  ;;  %v1320_v26 = vpop.f32.mrb[0].mxu1 }
 0x151   : > { %v468_v27 = vpop.f32.mrb[1].mxu0  ;;  %v1858_v28 = vmax.f32 %v1320_v26, 0.0  ;;  %v532_v29 = vpop.f32.mrb[1].mxu1  ;;  %v597_v34 = vmax.f32 %v1304_v25, 0.0 }
 0x152   : > { %v595_v30 = vmax.f32 %v468_v27, 0.0  ;;  %v1305_v31 = vpop.f32.mrb[2].mxu0  ;;  %v1860_v32 = vmax.f32 %v532_v29, 0.0  ;;  %v1321_v33 = vpop.f32.mrb[2].mxu1 }
 0x153   : > { %v598_v35 = vmax.f32 %v1305_v31, 0.0  ;;  %v471_v36 = vpop.f32.mrb[3].mxu0  ;;  %v1862_v37 = vmax.f32 %v1321_v33, 0.0  ;;  %v535_v38 = vpop.f32.mrb[3].mxu1  ;;  %v830_v48 = vmul.f32 %v597_v34, %v597_v34 }
 0x154   : > { %v596_v39 = vmax.f32 %v471_v36, 0.0  ;;  %v1864_v40 = vmax.f32 %v535_v38, 0.0  ;;  %v828_v41 = vmul.f32 %v595_v30, %v595_v30 }
 0x155   : > { %v1175_v42 = vpack.c.bf16 %v598_v35, %v597_v34  ;;  %v1215_v43 = vpack.c.bf16 %v1862_v37, %v1858_v28  ;;  %v831_v56 = vmul.f32 %v598_v35, %v598_v35 }
 0x156   : > { %v1170_v44 = vpack.c.bf16 %v596_v39, %v595_v30  ;;  %v788_v45 = vadd.f32 %v596_v39, %v595_v30  ;;  %v829_v46 = vmul.f32 %v596_v39, %v596_v39  ;;  %v1210_v47 = vpack.c.bf16 %v1864_v40, %v1860_v32 }
 0x157   : > { %1247 = vst [vmem:[%s1872_s24 + $0x8] sm:$0xff] %v1175_v42   ;;  %1255 = vst [vmem:[%s1872_s24 + $0x48] sm:$0xff] %v1215_v43  }
 0x158   : > { %1171 = vst [vmem:[%s1872_s24] sm:$0xff] %v1170_v44   ;;  %v789_v49 = vadd.f32 %v788_v45, %v597_v34  ;;  %v860_v50 = vadd.f32 %v829_v46, %v828_v41  ;;  %v1308_v51 = vpop.f32.mrb[4].mxu0  ;;  %1254 = vst [vmem:[%s1872_s24 + $0x40] sm:$0xff] %v1210_v47   ;;  %v1324_v52 = vpop.f32.mrb[4].mxu1 }
 0x159   : > { %v484_v53 = vpop.f32.mrb[5].mxu0  ;;  %v1878_v54 = vmax.f32 %v1324_v52, 0.0  ;;  %v548_v55 = vpop.f32.mrb[5].mxu1  ;;  %v601_v62 = vmax.f32 %v1308_v51, 0.0 }
 0x15a   : > { %v861_v57 = vadd.f32 %v860_v50, %v830_v48  ;;  %v599_v58 = vmax.f32 %v484_v53, 0.0  ;;  %v790_v59 = vadd.f32 %v789_v49, %v598_v35  ;;  %v1309_v60 = vpop.f32.mrb[6].mxu0  ;;  %v1325_v61 = vpop.f32.mrb[6].mxu1  ;;  %v1882_v8 = vmax.f32 %v548_v55, 0.0 }
 0x15b   : > { %v602_v63 = vmax.f32 %v1309_v60, 0.0  ;;  %v487_v0 = vpop.f32.mrb[7].mxu0  ;;  %v1880_v1 = vmax.f32 %v1325_v61, 0.0  ;;  %v551_v2 = vpop.f32.mrb[7].mxu1  ;;  %v834_v15 = vmul.f32 %v601_v62, %v601_v62 }
 0x15c   : > { %v791_v3 = vadd.f32 %v790_v59, %v599_v58  ;;  %v832_v4 = vmul.f32 %v599_v58, %v599_v58  ;;  %v862_v5 = vadd.f32 %v861_v57, %v831_v56  ;;  %v600_v6 = vmax.f32 %v487_v0, 0.0 }
 0x15d   : > { %v1185_v7 = vpack.c.bf16 %v602_v63, %v601_v62  ;;  %v1225_v9 = vpack.c.bf16 %v1880_v1, %v1878_v54  ;;  %v1888_v14 = vmax.f32 %v551_v2, 0.0  ;;  %v835_v24 = vmul.f32 %v602_v63, %v602_v63 }
 0x15e   : > { %v863_v10 = vadd.f32 %v862_v5, %v832_v4  ;;  %v1180_v11 = vpack.c.bf16 %v600_v6, %v599_v58  ;;  %v792_v12 = vadd.f32 %v791_v3, %v600_v6  ;;  %v833_v13 = vmul.f32 %v600_v6, %v600_v6 }
 0x15f   : > { %1249 = vst [vmem:[%s1872_s24 + $0x18] sm:$0xff] %v1185_v7   ;;  %1257 = vst [vmem:[%s1872_s24 + $0x58] sm:$0xff] %v1225_v9   ;;  %v1220_v21 = vpack.c.bf16 %v1888_v14, %v1882_v8 }
 0x160   : > { %1248 = vst [vmem:[%s1872_s24 + $0x10] sm:$0xff] %v1180_v11   ;;  %v793_v16 = vadd.f32 %v792_v12, %v601_v62  ;;  %v864_v17 = vadd.f32 %v863_v10, %v833_v13  ;;  %v1312_v18 = vpop.f32.mrb[8].mxu0  ;;  %v1328_v19 = vpop.f32.mrb[8].mxu1 }
 0x161   : > { %v500_v20 = vpop.f32.mrb[9].mxu0  ;;  %v1893_v22 = vmax.f32 %v1328_v19, 0.0  ;;  %v564_v23 = vpop.f32.mrb[9].mxu1  ;;  %v605_v31 = vmax.f32 %v1312_v18, 0.0  ;;  %1256 = vst [vmem:[%s1872_s24 + $0x50] sm:$0xff] %v1220_v21  }
 0x162   : > { %v865_v25 = vadd.f32 %v864_v17, %v834_v15  ;;  %v603_v26 = vmax.f32 %v500_v20, 0.0  ;;  %v794_v27 = vadd.f32 %v793_v16, %v602_v63  ;;  %v1313_v29 = vpop.f32.mrb[10].mxu0  ;;  %v1329_v30 = vpop.f32.mrb[10].mxu1  ;;  %v1898_v44 = vmax.f32 %v564_v23, 0.0 }
 0x163   : > { %v606_v33 = vmax.f32 %v1313_v29, 0.0  ;;  %v503_v34 = vpop.f32.mrb[11].mxu0  ;;  %v1896_v35 = vmax.f32 %v1329_v30, 0.0  ;;  %v567_v36 = vpop.f32.mrb[11].mxu1  ;;  %v838_v51 = vmul.f32 %v605_v31, %v605_v31 }
 0x164   : > { %v795_v38 = vadd.f32 %v794_v27, %v603_v26  ;;  %v836_v39 = vmul.f32 %v603_v26, %v603_v26  ;;  %v866_v41 = vadd.f32 %v865_v25, %v835_v24  ;;  %v604_v42 = vmax.f32 %v503_v34, 0.0 }
 0x165   : > { %v1195_v43 = vpack.c.bf16 %v606_v33, %v605_v31  ;;  %v1235_v45 = vpack.c.bf16 %v1896_v35, %v1893_v22  ;;  %v1904_v50 = vmax.f32 %v567_v36, 0.0  ;;  %v839_v61 = vmul.f32 %v606_v33, %v606_v33 }
 0x166   : > { %v867_v46 = vadd.f32 %v866_v41, %v836_v39  ;;  %v1190_v47 = vpack.c.bf16 %v604_v42, %v603_v26  ;;  %v796_v48 = vadd.f32 %v795_v38, %v604_v42  ;;  %v837_v49 = vmul.f32 %v604_v42, %v604_v42 }
 0x167   : > { %1251 = vst [vmem:[%s1872_s24 + $0x28] sm:$0xff] %v1195_v43   ;;  %1259 = vst [vmem:[%s1872_s24 + $0x68] sm:$0xff] %v1235_v45   ;;  %v1230_v58 = vpack.c.bf16 %v1904_v50, %v1898_v44 }
 0x168   : > { %1250 = vst [vmem:[%s1872_s24 + $0x20] sm:$0xff] %v1190_v47   ;;  %v797_v52 = vadd.f32 %v796_v48, %v605_v31  ;;  %v868_v53 = vadd.f32 %v867_v46, %v837_v49  ;;  %v1316_v55 = vpop.f32.mrb[12].mxu0  ;;  %v1332_v56 = vpop.f32.mrb[12].mxu1 }
 0x169   : > { %v516_v57 = vpop.f32.mrb[13].mxu0  ;;  %v1909_v59 = vmax.f32 %v1332_v56, 0.0  ;;  %v580_v60 = vpop.f32.mrb[13].mxu1  ;;  %v609_v4 = vmax.f32 %v1316_v55, 0.0  ;;  %1258 = vst [vmem:[%s1872_s24 + $0x60] sm:$0xff] %v1230_v58  }
 0x16a   : > { %v869_v62 = vadd.f32 %v868_v53, %v838_v51  ;;  %v607_v63 = vmax.f32 %v516_v57, 0.0  ;;  %v798_v0 = vadd.f32 %v797_v52, %v606_v33  ;;  %v1317_v2 = vpop.f32.mrb[14].mxu0  ;;  %v1333_v3 = vpop.f32.mrb[14].mxu1  ;;  %v1914_v16 = vmax.f32 %v580_v60, 0.0 }
 0x16b   : > { %v610_v5 = vmax.f32 %v1317_v2, 0.0  ;;  %v519_v6 = vpop.f32.mrb[15].mxu0  ;;  %v1912_v7 = vmax.f32 %v1333_v3, 0.0  ;;  %v583_v9 = vpop.f32.mrb[15].mxu1  ;;  %v842_v24 = vmul.f32 %v609_v4, %v609_v4  ;;  %v844_v33 = vmul.f32 %v1860_v32, %v1860_v32 }
 0x16c   : > { %v799_v10 = vadd.f32 %v798_v0, %v607_v63  ;;  %v840_v11 = vmul.f32 %v607_v63, %v607_v63  ;;  %v870_v12 = vadd.f32 %v869_v62, %v839_v61  ;;  %v608_v13 = vmax.f32 %v519_v6, 0.0 }
 0x16d   : > { %v1205_v15 = vpack.c.bf16 %v610_v5, %v609_v4  ;;  %v1245_v17 = vpack.c.bf16 %v1912_v7, %v1909_v59  ;;  %v1922_v23 = vmax.f32 %v583_v9, 0.0  ;;  %v843_v29 = vmul.f32 %v610_v5, %v610_v5 }
 0x16e   : > { %v871_v18 = vadd.f32 %v870_v12, %v840_v11  ;;  %v1200_v19 = vpack.c.bf16 %v608_v13, %v607_v63  ;;  %v800_v20 = vadd.f32 %v799_v10, %v608_v13  ;;  %v841_v21 = vmul.f32 %v608_v13, %v608_v13 }
 0x16f   : > { %1253 = vst [vmem:[%s1872_s24 + $0x38] sm:$0xff] %v1205_v15   ;;  %1261 = vst [vmem:[%s1872_s24 + $0x78] sm:$0xff] %v1245_v17   ;;  %v1240_v27 = vpack.c.bf16 %v1922_v23, %v1914_v16 }
 0x170   : > { %1252 = vst [vmem:[%s1872_s24 + $0x30] sm:$0xff] %v1200_v19   ;;  %v801_v25 = vadd.f32 %v800_v20, %v609_v4  ;;  %v872_v26 = vadd.f32 %v871_v18, %v841_v21 }
 0x171   : > { %1260 = vst [vmem:[%s1872_s24 + $0x70] sm:$0xff] %v1240_v27  }
 0x172   : > { %v873_v30 = vadd.f32 %v872_v26, %v842_v24  ;;  %v802_v31 = vadd.f32 %v801_v25, %v610_v5 }
 0x174   : > { %v803_v34 = vadd.f32 %v802_v31, %v1860_v32  ;;  %v874_v36 = vadd.f32 %v873_v30, %v843_v29 }
 0x175   : > { %1528 = shalt.err (!%p1525_p5)
}
 0x176   : > { %s1529_s29 = scalar_lea.hbm %s1928_s25, 2048  ;;  %s1533_s20 = scalar_lea.hbm %s2067_s2, 4096 }
 0x177   : > { %p1530_p9 = scmp.ne.s32.totalorder %s1928_s25, %s1529_s29  ;;  %p1534_p3 = scmp.lt.u32.totalorder %s1928_s25, %s2067_s2 }
 0x178   : > { %p1535_p7 = scmp.lt.u32.totalorder %s1533_s20, %s1529_s29  ;;  %p1537_p4 = scmp.lt.u32.totalorder %s1529_s29, %s1928_s25 }
 0x179   : > { %p1531_p1 = pnand %p1530_p9, %p1763_p10 }
 0x17a   : > { %p1536_p13 = por %p1535_p7, %p1534_p3 }
 0x17b   : > { %p1532_p2 = pneg %p1531_p1 }
 0x17c   : > { %p1538_p6 = por %p1537_p4, %p1536_p13 }
 0x17e   : > { %p1539_p8 = pnand %p1538_p6, %p1532_p2 }
 0x180   : > { %1542 = shalt.err (!%p1539_p8)
}
 0x181   : > { %s1641_s9 = smov 64   ;;  %s1642_s18 = smov 4   ;;  %v875_v32 = vadd.f32 %v874_v36, %v844_v33  ;;  %v804_v38 = vadd.f32 %v803_v34, %v1864_v40  ;;  %v845_v39 = vmul.f32 %v1864_v40, %v1864_v40  ;;  %v846_v41 = vmul.f32 %v1858_v28, %v1858_v28  ;;  %v787_v26 = vld [vmem:[%s1855_s22] sm:$0x1]  ;;  %v827_v29 = vld [vmem:[%s1855_s22 + $0x1] sm:$0x1] }
 0x182   : > { %1356 = dma.vmem_to_hbm [thread:$0]  (%p1763_p10), %s1930_s11, 2048, %s1928_s25, %s900_s8, %s1641_s9, %s1641_s9, %s1642_s18   ;;  %v847_v45 = vmul.f32 %v1862_v37, %v1862_v37  ;;  %v848_v48 = vmul.f32 %v1882_v8, %v1882_v8  ;;  %v849_v53 = vmul.f32 %v1888_v14, %v1888_v14  ;;  %v853_v63 = vmul.f32 %v1904_v50, %v1904_v50 }
 0x183   : > { %v805_v42 = vadd.f32 %v804_v38, %v1858_v28  ;;  %v876_v43 = vadd.f32 %v875_v32, %v845_v39  ;;  %v850_v28 = vmul.f32 %v1878_v54, %v1878_v54  ;;  %v857_v10 = vmul.f32 %v1922_v23, %v1922_v23  ;;  %s1130_s11 = sshll.u32 %s1625_s15, 7  ;;  %s935_s25 = sshll.u32 %s1855_s22, 4  ;;  %s2017_s25 = int_to_ptr.vmem [resolvable:$true] %s935_s25 }
 0x184   : > { %s2015_s21 = scalar_lea.hbm %s2068_s3, %s1130_s11  ;;  %s905_s4 = scalar_lea.sflag [#allocation9], %s1822_s30 }
 0x185   : > { %v877_v46 = vadd.f32 %v876_v43, %v846_v41  ;;  %v806_v47 = vadd.f32 %v805_v42, %v1862_v37  ;;  %v851_v37 = vmul.f32 %v1880_v1, %v1880_v1  ;;  %s1543_s6 = scalar_lea.vmem %s2017_s25, 128  ;;  %s1643_s15 = smov [#allocation8]  }
 0x186   : > { %p1544_p12 = scmp.ne.s32.totalorder %s2017_s25, %s1543_s6  ;;  %s1547_s29 = sshll.u32 %s1643_s15, 4  ;;  %s1548_s29 = int_to_ptr.vmem [resolvable:$false] %s1547_s29 }
 0x187   : > { %v807_v49 = vadd.f32 %v806_v47, %v1882_v8  ;;  %v878_v51 = vadd.f32 %v877_v46, %v847_v45  ;;  %v852_v8 = vmul.f32 %v1898_v44, %v1898_v44  ;;  %s1549_s7 = scalar_lea.vmem %s1548_s29, 256  ;;  %p1550_p5 = scmp.lt.s32.totalorder %s2017_s25, %s1548_s29 }
 0x188   : > { %p1545_p11 = pnand %p1544_p12, %p1763_p10  ;;  %p1551_p9 = scmp.lt.s32.totalorder %s1549_s7, %s1543_s6 }
 0x189   : > { %v879_v52 = vadd.f32 %v878_v51, %v848_v48  ;;  %v808_v40 = vadd.f32 %v807_v49, %v1888_v14 }
 0x18a   : > { %p1546_p0 = pneg %p1545_p11  ;;  %p1552_p1 = por %p1551_p9, %p1550_p5 }
 0x18b   : > { %v809_v55 = vadd.f32 %v808_v40, %v1878_v54  ;;  %v880_v56 = vadd.f32 %v879_v52, %v849_v53  ;;  %v854_v54 = vmul.f32 %v1893_v22, %v1893_v22 }
 0x18c   : > { %p1553_p2 = pnand %p1552_p1, %p1546_p0 }
 0x18d   : > { %v881_v57 = vadd.f32 %v880_v56, %v850_v28  ;;  %v810_v58 = vadd.f32 %v809_v55, %v1880_v1  ;;  %v855_v1 = vmul.f32 %v1896_v35, %v1896_v35 }
 0x18f   : > { %v811_v60 = vadd.f32 %v810_v58, %v1898_v44  ;;  %v882_v61 = vadd.f32 %v881_v57, %v851_v37  ;;  %v856_v44 = vmul.f32 %v1914_v16, %v1914_v16 }
 0x191   : > { %v883_v62 = vadd.f32 %v882_v61, %v852_v8  ;;  %v812_v14 = vadd.f32 %v811_v60, %v1904_v50 }
 0x193   : > { %v813_v0 = vadd.f32 %v812_v14, %v1893_v22  ;;  %v884_v2 = vadd.f32 %v883_v62, %v853_v63  ;;  %v858_v22 = vmul.f32 %v1909_v59, %v1909_v59 }
 0x195   : > { %v885_v3 = vadd.f32 %v884_v2, %v854_v54  ;;  %v814_v4 = vadd.f32 %v813_v0, %v1896_v35  ;;  %v859_v35 = vmul.f32 %v1912_v7, %v1912_v7 }
 0x197   : > { %v815_v5 = vadd.f32 %v814_v4, %v1914_v16  ;;  %v886_v6 = vadd.f32 %v885_v3, %v855_v1 }
 0x199   : > { %v887_v9 = vadd.f32 %v886_v6, %v856_v44  ;;  %v816_v50 = vadd.f32 %v815_v5, %v1922_v23 }
 0x19b   : > { %v817_v11 = vadd.f32 %v816_v50, %v1909_v59  ;;  %v888_v12 = vadd.f32 %v887_v9, %v857_v10 }
 0x19d   : > { %v818_v13 = vadd.f32 %v817_v11, %v1912_v7  ;;  %v889_v15 = vadd.f32 %v888_v12, %v858_v22 }
 0x19f   : > { %v819_v16 = vrot.slane %v818_v13, 4  ;;  %v890_v17 = vadd.f32 %v889_v15, %v859_v35 }
 0x1a1   : > { %v820_v18 = vadd.f32 %v819_v16, %v818_v13  ;;  %v891_v19 = vrot.slane %v890_v17, 4 }
 0x1a3   : > { %v821_v20 = vrot.slane %v820_v18, 2  ;;  %v892_v21 = vadd.f32 %v891_v19, %v890_v17 }
 0x1a5   : > { %v822_v23 = vadd.f32 %v821_v20, %v820_v18  ;;  %v893_v59 = vrot.slane %v892_v21, 2 }
 0x1a7   : > { %v823_v24 = vrot.slane %v822_v23, 1  ;;  %v894_v25 = vadd.f32 %v893_v59, %v892_v21 }
 0x1a9   : > { %v824_v27 = vadd.f32 %v823_v24, %v822_v23  ;;  %v895_v7 = vrot.slane %v894_v25, 1 }
 0x1ab   : > { %v896_v30 = vadd.f32 %v895_v7, %v894_v25  ;;  %v825_v31 = vadd.f32 %v824_v27, %v787_v26 }
 0x1ad   : > { %826 = vst [vmem:[%s1855_s22] sm:$0x1] %v825_v31  ;;  %v897_v33 = vadd.f32 %v896_v30, %v827_v29 }
 0x1af   : > { %898 = vst [vmem:[%s1855_s22 + $0x1] sm:$0x1] %v897_v33 }
 0x1b0   : > { %1556 = shalt.err (!%p1553_p2)
}
 0x1b1   : > { %s1557_s30 = scalar_lea.hbm %s2015_s21, 128  ;;  %s1561_s20 = scalar_lea.hbm %s2068_s3, 256 }
 0x1b2   : > { %p1558_p3 = scmp.ne.s32.totalorder %s2015_s21, %s1557_s30  ;;  %p1562_p4 = scmp.lt.u32.totalorder %s2015_s21, %s2068_s3 }
 0x1b3   : > { %p1563_p6 = scmp.lt.u32.totalorder %s1561_s20, %s1557_s30  ;;  %p1565_p12 = scmp.lt.u32.totalorder %s1557_s30, %s2015_s21 }
 0x1b4   : > { %p1559_p7 = pnand %p1558_p3, %p1763_p10 }
 0x1b5   : > { %p1564_p8 = por %p1563_p6, %p1562_p4 }
 0x1b6   : > { %p1560_p13 = pneg %p1559_p7 }
 0x1b7   : > { %p1566_p11 = por %p1565_p12, %p1564_p8 }
 0x1b9   : > { %p1567_p0 = pnand %p1566_p11, %p1560_p13 }
 0x1bb   : > { %1570 = shalt.err (!%p1567_p0)
}
 0x1bc   : > { %1357 = dma.vmem_to_hbm [thread:$0]  (%p1763_p10), %s2017_s25, 128, %s2015_s21, %s905_s4  }
 0x1bd PF: > { %s947_s9 = sand.u32 1, %s1613_s12   ;;  %p2086_p5 = scmp.ne.s32.totalorder %s2076_s23, 0 }
 0x1be   : > { %p2087_p9 = scmp.ge.s32.totalorder %s1633_s17, 2  ;;  %s948_s18 = scalar_lea.sflag [#allocation4], %s947_s9 }
 0x1c0   : > { %p1369_p1 = pnand %p2087_p9, %p2086_p5 }
 0x1c2   : > { %1604 = dma.done.wait (!%p1369_p1), %s948_s18, 2048  }
 0x1c3   : > { %1606 = vsyncadd (!%p1369_p1), %s948_s18, 4294965248  ;;  %s957_s11 = scalar_lea.sflag [#allocation9], %s947_s9 }
 0x1c4   : > { %1608 = dma.done.wait (!%p1369_p1), %s957_s11, 128  }
 0x1c5   : > { %1610 = vsyncadd (!%p1369_p1), %s957_s11, 4294967168  ;;  %s24_s17 = sadd.s32 1, %s1633_s17   ;;  %s2088_s12 = smov %s1617_s13 }
 0x1c6   : > { %p21_p2 = scmp.ge.s32.totalorder %s24_s17, 4   ;;  %s2089_s13 = smov %s1621_s14 }
 0x1c7   : > { %s2090_s14 = smov %s1772_s5  ;;  %s2091_s15 = smov %s1629_s16 }
 0x1c8   : > { %s2092_s16 = smov %s2094_s28  ;;  %23 = sbr.rel (!%p21_p2) target bundleno = 9 (0x9), region = 98 }
 0x1cf   :  { %962 = vsyncpa [#allocation3], 1 }
 0x1d0   :  { %964 = vsyncpa [#allocation3 + $0x1], 1 }
 0x1d1   :  { %965 = vsyncpa [#allocation6], 1 }
 0x1d2   :  { %966 = vsyncpa [#allocation4], 1 }
 0x1d3   :  { %968 = vsyncpa [#allocation4 + $0x1], 1 }
 0x1d4   :  { %969 = vsyncpa [#allocation9], 1 }
 0x1d5   :  { %971 = vsyncpa [#allocation9 + $0x1], 1 }

// kernel: tpu_custom_call.1
= control target key start
LH: loop header
LB: loop body
LE: loop exit
PB: predicated region body
PF: predicated region fallthrough
CT: control target
= control target key end

     0   :  { %9 = vsyncpa [#allocation3], 0  ;;  %s2065_s0 = inlined_call_operand.hbm [shape: bf16[512,128], index: 0, kind: input, shape index: {}]   ;;  %s2066_s1 = inlined_call_operand.hbm [shape: bf16[128,128], index: 1, kind: input, shape index: {}]   ;;  %s2067_s2 = inlined_call_operand.hbm [shape: bf16[512,128], index: 2, kind: output, shape index: {0}]   ;;  %s2068_s3 = inlined_call_operand.hbm [shape: f32[2,8,128], index: 3, kind: output, shape index: {1}]  }
   0x1   :  { %11 = vsyncpa [#allocation3 + $0x1], 0 }
   0x2   :  { %12 = vsyncpa [#allocation6], 0 }
   0x3   :  { %13 = vsyncpa [#allocation4], 0 }
   0x4   :  { %15 = vsyncpa [#allocation4 + $0x1], 0 }
   0x5   :  { %16 = vsyncpa [#allocation9], 0 }
   0x6   :  { %18 = vsyncpa [#allocation9 + $0x1], 0  ;;  %s1664_s12 = smov 0   ;;  %s1666_s13 = smov 0  }
   0x7   :  { %s1668_s14 = smov 0   ;;  %s1670_s15 = smov 0  }
   0x8   :  { %s1672_s16 = smov 0   ;;  %s1674_s17 = smov 0  }
   0x9 LB: > { %s1057_s18 = sadd.s32 4294967295, %s1633_s17   ;;  %s1058_s19 = sadd.s32 4294967294, %s1633_s17   ;;  %s1633_s17 = sphi %s1674_s17, %s24_s17   ;;  %s1629_s16 = sphi %s1672_s16, %s2092_s16   ;;  %s1625_s15 = sphi %s1670_s15, %s2091_s15   ;;  %s1621_s14 = sphi %s1668_s14, %s2090_s14   ;;  %s1617_s13 = sphi %s1666_s13, %s2089_s13   ;;  %s1613_s12 = sphi %s1664_s12, %s2088_s12  }
   0xa   : > { %p58_p0 = scmp.ne.s32.totalorder %s1617_s13, %s1613_s12  ;;  %p1698_p1 = scmp.eq.s32.totalorder %s1057_s18, 0 }
   0xb   : > { %p1702_p2 = scmp.eq.s32.totalorder %s1057_s18, 1  ;;  %p111_p3 = scmp.eq.s32.totalorder %s1058_s19, 1 }
   0xc   : > { %s2073_s20 = scalar_select %p1698_p1, 1, 0 }
   0xd   : > { %s2074_s21 = scalar_select %p1702_p2, 1, 0 }
   0xe   : > { %p1708_p4 = por %p1698_p1, %p58_p0  ;;  %p1059_p5 = scmp.ge.s32.totalorder %s1633_s17, 1 }
   0xf   : > { %p1713_p6 = por %p111_p3, %p58_p0  ;;  %p144_p7 = scmp.lt.s32.totalorder %s1633_s17, 3 }
  0x10   : > { %s2075_s22 = scalar_select %p1708_p4, 1, 0 }
  0x11   : > { %s2076_s23 = scalar_select %p1713_p6, 1, 0 }
  0x12   : > { %p1718_p8 = pnand %p1059_p5, %p144_p7  ;;  %s1635_s25 = smov [#allocation5]  }
  0x13   : > { %s156_s26 = sshll.u32 %s1635_s25, 4  ;;  %s36_s28 = sadd.s32 1, %s1629_s16  ;;  %s157_s26 = int_to_ptr.vmem [resolvable:$true] %s156_s26 }
  0x14   : > { %s2077_s24 = scalar_select %p1718_p8, 1, 0 }
  0x15   : > { %p1360_p9 = pneg %p1718_p8  ;;  %s1457_s4 = scalar_lea.hbm %s2066_s1, 1024 }
  0x16   : > { %p1458_p12 = scmp.ne.s32.totalorder %s2066_s1, %s1457_s4  ;;  %p1464_p5 = scmp.lt.u32.totalorder %s1457_s4, %s2066_s1 }
  0x17   : > { %p1727_p11 = pnand %p1360_p9, %p1698_p1 }
  0x19   : > { %p1459_p13 = pneg %p1727_p11 }
  0x1b   : > { %p1460_p0 = pnand %p1459_p13, %p1458_p12 }
  0x1d   : > { %p1461_p3 = pneg %p1460_p0 }
  0x1f   : > { %p1466_p7 = pnand %p1464_p5, %p1461_p3 }
  0x21   : > { %1469 = shalt.err (!%p1466_p7)
}
  0x22   : > { %s1470_s9 = scalar_lea.vmem %s157_s26, 1024  ;;  %p1478_p1 = scmp.lt.s32.totalorder %s157_s26, %s157_s26 }
  0x23   : > { %p1471_p9 = scmp.ne.s32.totalorder %s157_s26, %s1470_s9  ;;  %p1479_p4 = scmp.lt.s32.totalorder %s1470_s9, %s1470_s9 }
  0x25   : > { %p1473_p10 = pnand %p1471_p9, %p1459_p13  ;;  %p1480_p8 = por %p1479_p4, %p1478_p1 }
  0x27   : > { %p1474_p6 = pneg %p1473_p10 }
  0x29   : > { %p1481_p2 = pnand %p1480_p8, %p1474_p6 }
  0x2b   : > { %1484 = shalt.err (!%p1481_p2)
}
  0x2c   : > { %s1636_s10 = smov 64   ;;  %s1637_s11 = smov 4  }
  0x2d   : > { %1363 = dma.hbm_to_vmem [thread:$0]  (!%p1727_p11), %s2066_s1, 1024, %s157_s26, [#allocation6], %s1636_s10, %s1636_s10, %s1637_s11  }
  0x2e   : > { %p38_p1 = scmp.ge.s32.totalorder %s36_s28, 2  ;;  %s45_s25 = sadd.s32 1, %s1621_s14 }
  0x2f   : > { %p52_p2 = scmp.ne.s32.totalorder %s1621_s14, %s1617_s13  ;;  %p53_p4 = scmp.eq.s32.totalorder %s1633_s17, 0 }
  0x30   : > { %s2094_s28 = smov (%p38_p1, %s36_s28), 0  ;;  %p2080_p8 = scmp.ne.s32.totalorder %s2074_s21, 0 }
  0x31   : > { %p1757_p6 = por %p53_p4, %p52_p2  ;;  %s42_s30 = ssub.s32 %s1629_s16, %s2094_s28 }
  0x32   : > { %p1763_p10 = por %p2080_p8, %p52_p2  ;;  %p1376_p12 = scmp.lt.s32.totalorder %s1633_s17, 2 }
  0x33   : > { %p43_p11 = scmp.eq.s32.totalorder %s42_s30, 0  ;;  %s170_s26 = sand.u32 1, %s1621_s14  }
  0x34   : > { %s1062_s4 = sshll.u32 %s170_s26, 7  ;;  %s1133_s6 = sshll.u32 %s1629_s16, 11 }
  0x35   : > { %s1772_s5 = scalar_select %p43_p11, %s1621_s14, %s45_s25  }
  0x36   : > { %s1778_s9 = scalar_lea.hbm %s2065_s0, %s1133_s6  ;;  %s174_s21 = scalar_lea.vmem [#allocation2], %s1062_s4 }
  0x37   : > { %s182_s18 = sshll.u32 %s174_s21, 4  ;;  %p1784_p13 = pnand %p1376_p12, %p1757_p6  ;;  %s1780_s18 = int_to_ptr.vmem [resolvable:$true] %s182_s18 }
  0x38   : > { %s1788_s25 = scalar_lea.sflag [#allocation3], %s170_s26  ;;  %s1485_s30 = scalar_lea.hbm %s1778_s9, 2048 }
  0x39   : > { %p1486_p0 = scmp.ne.s32.totalorder %s1778_s9, %s1485_s30  ;;  %p1487_p3 = pneg %p1784_p13 }
  0x3a   : > { %s1490_s29 = scalar_lea.hbm %s2065_s0, 4096  ;;  %p1491_p9 = scmp.lt.u32.totalorder %s1778_s9, %s2065_s0 }
  0x3b   : > { %p1488_p5 = pnand %p1487_p3, %p1486_p0  ;;  %p1492_p1 = scmp.lt.u32.totalorder %s1490_s29, %s1485_s30 }
  0x3c   : > { %p1494_p4 = scmp.lt.u32.totalorder %s1485_s30, %s1778_s9 }
  0x3d   : > { %p1489_p7 = pneg %p1488_p5  ;;  %p1493_p2 = por %p1492_p1, %p1491_p9 }
  0x3f   : > { %p1495_p6 = por %p1494_p4, %p1493_p2 }
  0x41   : > { %p1496_p8 = pnand %p1495_p6, %p1489_p7 }
  0x43   : > { %1499 = shalt.err (!%p1496_p8)
}
  0x44   : > { %s1500_s26 = scalar_lea.vmem %s1780_s18, 2048  ;;  %s1638_s21 = smov [#allocation2]  }
  0x45   : > { %p1501_p12 = scmp.ne.s32.totalorder %s1780_s18, %s1500_s26  ;;  %s1505_s4 = sshll.u32 %s1638_s21, 4  ;;  %s1506_s4 = int_to_ptr.vmem [resolvable:$false] %s1505_s4 }
  0x46   : > { %s1507_s6 = scalar_lea.vmem %s1506_s4, 4096  ;;  %p1508_p5 = scmp.lt.s32.totalorder %s1780_s18, %s1506_s4 }
  0x47   : > { %p1503_p11 = pnand %p1501_p12, %p1487_p3  ;;  %p1509_p9 = scmp.lt.s32.totalorder %s1507_s6, %s1500_s26 }
  0x49   : > { %p1504_p0 = pneg %p1503_p11  ;;  %p1510_p1 = por %p1509_p9, %p1508_p5 }
  0x4b   : > { %p1511_p2 = pnand %p1510_p1, %p1504_p0 }
  0x4d   : > { %1514 = shalt.err (!%p1511_p2)
}
  0x4e   : > { %1367 = dma.hbm_to_vmem [thread:$0]  (!%p1784_p13), %s1778_s9, 2048, %s1780_s18, %s1788_s25, %s1636_s10, %s1636_s10, %s1637_s11  }
  0x4f   : > { %p2083_p3 = scmp.ne.s32.totalorder %s2077_s24, 0 }
  0x50   : > { %s1822_s30 = sand.u32 (!%p2083_p3), 1, %s1617_s13   ;;  %p2084_p7 = scmp.ne.s32.totalorder (!%p2083_p3), %s2075_s22, 0 }
  0x51   : > { %194 = sbr.rel (%p2083_p3) target bundleno = 445 (0x1bd), region = 28  ;;  %s1066_s29 = sshll.u32 (!%p2083_p3), %s1822_s30, 7 }
  0x52   : > { %s197_s7 = scalar_lea.sflag (!%p2083_p3), [#allocation3], %s1822_s30  ;;  %s1828_s19 = scalar_lea.vmem (!%p2083_p3), [#allocation2], %s1066_s29 }
  0x58   : > { %1596 = dma.done.wait (%p2084_p7), %s197_s7, 2048  }
  0x59   : > { %1598 = vsyncadd (%p2084_p7), %s197_s7, 4294965248  ;;  %p2085_p13 = scmp.ne.s32.totalorder %s2073_s20, 0 }
  0x5b   : > { %1600 = dma.done.wait (%p2085_p13), [#allocation6], 1024  }
  0x5c   : > { %1602 = vsyncadd (%p2085_p13), [#allocation6], 4294966272  ;;  %v1433_v0 = vld [vmem:[#allocation5] sm:$0xff]   ;;  %v1434_v1 = vld [vmem:[#allocation5 + $0x8] sm:$0xff]   ;;  %s1069_s20 = sshll.u32 %s1822_s30, 3  ;;  %v1639_v24 = vmov 0.0  }
  0x5d   : > { %1286 = vmatprep.subr.bf16.mxu0 %v1433_v0  ;;  %1334 = vmatprep.subr.bf16.mxu1 %v1433_v0  ;;  %v1435_v2 = vld [vmem:[#allocation5 + $0x10] sm:$0xff]   ;;  %v1436_v3 = vld [vmem:[#allocation5 + $0x18] sm:$0xff]   ;;  %v1441_v4 = vld [vmem:[%s1828_s19] sm:$0xff]   ;;  %s1855_s22 = scalar_lea.vmem [#allocation8], %s1069_s20  ;;  %s1872_s24 = scalar_lea.vmem [#allocation7], %s1066_s29 }
  0x5e   : > { %1287 = vmatpush3.bf16.msra.mxu0 %v1433_v0  ;;  %1342 = vmatpush3.bf16.msra.mxu1 %v1433_v0  ;;  %v1437_v5 = vld [vmem:[#allocation5 + $0x20] sm:$0xff]   ;;  %v1438_v6 = vld [vmem:[#allocation5 + $0x28] sm:$0xff]   ;;  %v1439_v8 = vld [vmem:[#allocation5 + $0x30] sm:$0xff]   ;;  %241 = vst [vmem:[%s1855_s22] sm:$0xff] %v1639_v24  ;;  %s1166_s10 = sshll.u32 %s1625_s15, 11  ;;  %s919_s11 = sshll.u32 %s1872_s24, 4  ;;  %s1930_s11 = int_to_ptr.vmem [resolvable:$true] %s919_s11 }
  0x5f   : > { %1288 = vmatprep.subr.bf16.mxu0 %v1434_v1  ;;  %1335 = vmatprep.subr.bf16.mxu1 %v1434_v1  ;;  %v1449_v7 = vld [vmem:[%s1828_s19 + $0x40] sm:$0xff]   ;;  %v1440_v9 = vld [vmem:[#allocation5 + $0x38] sm:$0xff]   ;;  %v1442_v10 = vld [vmem:[%s1828_s19 + $0x8] sm:$0xff]   ;;  %s1928_s25 = scalar_lea.hbm %s2067_s2, %s1166_s10  ;;  %s900_s8 = scalar_lea.sflag [#allocation4], %s1822_s30 }
  0x60   : > { %1302 = vmatprep.mubr.bf16.mxu0 %v1441_v4  ;;  %1318 = vmatprep.mubr.bf16.mxu1 %v1449_v7  ;;  %v1450_v11 = vld [vmem:[%s1828_s19 + $0x48] sm:$0xff]   ;;  %v1443_v12 = vld [vmem:[%s1828_s19 + $0x10] sm:$0xff]   ;;  %v1444_v14 = vld [vmem:[%s1828_s19 + $0x18] sm:$0xff]   ;;  %s1515_s26 = scalar_lea.vmem %s1930_s11, 2048  ;;  %s1640_s21 = smov [#allocation7]  }
  0x61   : > { %v1451_v13 = vld [vmem:[%s1828_s19 + $0x50] sm:$0xff]   ;;  %v1452_v15 = vld [vmem:[%s1828_s19 + $0x58] sm:$0xff]   ;;  %v1445_v16 = vld [vmem:[%s1828_s19 + $0x20] sm:$0xff]   ;;  %p1516_p4 = scmp.ne.s32.totalorder %s1930_s11, %s1515_s26  ;;  %s1519_s4 = sshll.u32 %s1640_s21, 4  ;;  %s1520_s4 = int_to_ptr.vmem [resolvable:$false] %s1519_s4 }
  0x62   : > { %1289 = vmatpush3.bf16.msra.mxu0 %v1434_v1  ;;  %1343 = vmatpush3.bf16.msra.mxu1 %v1434_v1  ;;  %v1453_v17 = vld [vmem:[%s1828_s19 + $0x60] sm:$0xff]   ;;  %v1446_v18 = vld [vmem:[%s1828_s19 + $0x28] sm:$0xff]   ;;  %v1447_v20 = vld [vmem:[%s1828_s19 + $0x30] sm:$0xff]   ;;  %s1521_s6 = scalar_lea.vmem %s1520_s4, 4096  ;;  %p1522_p12 = scmp.lt.s32.totalorder %s1930_s11, %s1520_s4 }
  0x63   : > { %1290 = vmatprep.subr.bf16.mxu0 %v1435_v2  ;;  %1336 = vmatprep.subr.bf16.mxu1 %v1435_v2  ;;  %v1454_v19 = vld [vmem:[%s1828_s19 + $0x68] sm:$0xff]   ;;  %v1455_v21 = vld [vmem:[%s1828_s19 + $0x70] sm:$0xff]   ;;  %v1448_v22 = vld [vmem:[%s1828_s19 + $0x38] sm:$0xff]   ;;  %p1517_p6 = pnand %p1516_p4, %p1763_p10  ;;  %p1523_p11 = scmp.lt.s32.totalorder %s1521_s6, %s1515_s26 }
  0x64   : > { %v1456_v23 = vld [vmem:[%s1828_s19 + $0x78] sm:$0xff]  }
  0x65   : > { %p1518_p8 = pneg %p1517_p6  ;;  %p1524_p0 = por %p1523_p11, %p1522_p12 }
  0x66   : > { %1291 = vmatpush3.bf16.msra.mxu0 %v1435_v2  ;;  %1344 = vmatpush3.bf16.msra.mxu1 %v1435_v2 }
  0x67   : > { %1292 = vmatprep.subr.bf16.mxu0 %v1436_v3  ;;  %1337 = vmatprep.subr.bf16.mxu1 %v1436_v3  ;;  %p1525_p5 = pnand %p1524_p0, %p1518_p8 }
  0x6a   : > { %1293 = vmatpush3.bf16.msra.mxu0 %v1436_v3  ;;  %1345 = vmatpush3.bf16.msra.mxu1 %v1436_v3 }
  0x6b   : > { %1294 = vmatprep.subr.bf16.mxu0 %v1437_v5  ;;  %1338 = vmatprep.subr.bf16.mxu1 %v1437_v5 }
  0x6e   : > { %1295 = vmatpush3.bf16.msra.mxu0 %v1437_v5  ;;  %1346 = vmatpush3.bf16.msra.mxu1 %v1437_v5 }
  0x6f   : > { %1296 = vmatprep.subr.bf16.mxu0 %v1438_v6  ;;  %1339 = vmatprep.subr.bf16.mxu1 %v1438_v6 }
  0x72   : > { %1297 = vmatpush3.bf16.msra.mxu0 %v1438_v6  ;;  %1347 = vmatpush3.bf16.msra.mxu1 %v1438_v6 }
  0x73   : > { %1298 = vmatprep.subr.bf16.mxu0 %v1439_v8  ;;  %1340 = vmatprep.subr.bf16.mxu1 %v1439_v8 }
  0x76   : > { %1299 = vmatpush3.bf16.msra.mxu0 %v1439_v8  ;;  %1348 = vmatpush3.bf16.msra.mxu1 %v1439_v8 }
  0x77   : > { %1300 = vmatprep.subr.bf16.mxu0 %v1440_v9  ;;  %1341 = vmatprep.subr.bf16.mxu1 %v1440_v9 }
  0x7a   : > { %1301 = vmatpush3.bf16.msra.mxu0 %v1440_v9  ;;  %1349 = vmatpush3.bf16.msra.mxu1 %v1440_v9 }
  0x7d   : > { %1303 = vmatmul.mubr.bf16.vlgmr.msra.gmra.mrb[0].mxu0 %v1442_v10  ;;  %1319 = vmatmul.mubr.bf16.vlgmr.msra.gmra.mrb[0].mxu1 %v1450_v11 }
  0x7e   : > { %1306 = vmatprep.mubr.bf16.mxu0 %v1443_v12  ;;  %1322 = vmatprep.mubr.bf16.mxu1 %v1451_v13 }
  0x85   : > { %1307 = vmatmul.mubr.bf16.gmra.mrb[4].mxu0 %v1444_v14  ;;  %1323 = vmatmul.mubr.bf16.gmra.mrb[4].mxu1 %v1452_v15 }
  0x86   : > { %1310 = vmatprep.mubr.bf16.mxu0 %v1445_v16  ;;  %1326 = vmatprep.mubr.bf16.mxu1 %v1453_v17 }
  0x8d   : > { %1311 = vmatmul.mubr.bf16.gmra.mrb[8].mxu0 %v1446_v18  ;;  %1327 = vmatmul.mubr.bf16.gmra.mrb[8].mxu1 %v1454_v19 }
  0x8e   : > { %1314 = vmatprep.mubr.bf16.mxu0 %v1447_v20  ;;  %1330 = vmatprep.mubr.bf16.mxu1 %v1455_v21 }
  0x95   : > { %1315 = vmatmul.mubr.bf16.gmra.mrb[12].mxu0 %v1448_v22  ;;  %1331 = vmatmul.mubr.bf16.gmra.mrb[12].mxu1 %v1456_v23 }
 0x150   : > { %v1304_v25 = vpop.f32.mrb[0].mxu0  ;;  %v1320_v26 = vpop.f32.mrb[0].mxu1 }
 0x151   : > { %v468_v27 = vpop.f32.mrb[1].mxu0  ;;  %v1858_v28 = vmax.f32 %v1320_v26, 0.0  ;;  %v532_v29 = vpop.f32.mrb[1].mxu1  ;;  %v597_v34 = vmax.f32 %v1304_v25, 0.0 }
 0x152   : > { %v595_v30 = vmax.f32 %v468_v27, 0.0  ;;  %v1305_v31 = vpop.f32.mrb[2].mxu0  ;;  %v1860_v32 = vmax.f32 %v532_v29, 0.0  ;;  %v1321_v33 = vpop.f32.mrb[2].mxu1 }
 0x153   : > { %v598_v35 = vmax.f32 %v1305_v31, 0.0  ;;  %v471_v36 = vpop.f32.mrb[3].mxu0  ;;  %v1862_v37 = vmax.f32 %v1321_v33, 0.0  ;;  %v535_v38 = vpop.f32.mrb[3].mxu1  ;;  %v830_v48 = vmul.f32 %v597_v34, %v597_v34 }
 0x154   : > { %v596_v39 = vmax.f32 %v471_v36, 0.0  ;;  %v1864_v40 = vmax.f32 %v535_v38, 0.0  ;;  %v828_v41 = vmul.f32 %v595_v30, %v595_v30 }
 0x155   : > { %v1175_v42 = vpack.c.bf16 %v598_v35, %v597_v34  ;;  %v1215_v43 = vpack.c.bf16 %v1862_v37, %v1858_v28  ;;  %v831_v56 = vmul.f32 %v598_v35, %v598_v35 }
 0x156   : > { %v1170_v44 = vpack.c.bf16 %v596_v39, %v595_v30  ;;  %v788_v45 = vadd.f32 %v596_v39, %v595_v30  ;;  %v829_v46 = vmul.f32 %v596_v39, %v596_v39  ;;  %v1210_v47 = vpack.c.bf16 %v1864_v40, %v1860_v32 }
 0x157   : > { %1247 = vst [vmem:[%s1872_s24 + $0x8] sm:$0xff] %v1175_v42   ;;  %1255 = vst [vmem:[%s1872_s24 + $0x48] sm:$0xff] %v1215_v43  }
 0x158   : > { %1171 = vst [vmem:[%s1872_s24] sm:$0xff] %v1170_v44   ;;  %v789_v49 = vadd.f32 %v788_v45, %v597_v34  ;;  %v860_v50 = vadd.f32 %v829_v46, %v828_v41  ;;  %v1308_v51 = vpop.f32.mrb[4].mxu0  ;;  %1254 = vst [vmem:[%s1872_s24 + $0x40] sm:$0xff] %v1210_v47   ;;  %v1324_v52 = vpop.f32.mrb[4].mxu1 }
 0x159   : > { %v484_v53 = vpop.f32.mrb[5].mxu0  ;;  %v1878_v54 = vmax.f32 %v1324_v52, 0.0  ;;  %v548_v55 = vpop.f32.mrb[5].mxu1  ;;  %v601_v62 = vmax.f32 %v1308_v51, 0.0 }
 0x15a   : > { %v861_v57 = vadd.f32 %v860_v50, %v830_v48  ;;  %v599_v58 = vmax.f32 %v484_v53, 0.0  ;;  %v790_v59 = vadd.f32 %v789_v49, %v598_v35  ;;  %v1309_v60 = vpop.f32.mrb[6].mxu0  ;;  %v1325_v61 = vpop.f32.mrb[6].mxu1  ;;  %v1882_v8 = vmax.f32 %v548_v55, 0.0 }
 0x15b   : > { %v602_v63 = vmax.f32 %v1309_v60, 0.0  ;;  %v487_v0 = vpop.f32.mrb[7].mxu0  ;;  %v1880_v1 = vmax.f32 %v1325_v61, 0.0  ;;  %v551_v2 = vpop.f32.mrb[7].mxu1  ;;  %v834_v15 = vmul.f32 %v601_v62, %v601_v62 }
 0x15c   : > { %v791_v3 = vadd.f32 %v790_v59, %v599_v58  ;;  %v832_v4 = vmul.f32 %v599_v58, %v599_v58  ;;  %v862_v5 = vadd.f32 %v861_v57, %v831_v56  ;;  %v600_v6 = vmax.f32 %v487_v0, 0.0 }
 0x15d   : > { %v1185_v7 = vpack.c.bf16 %v602_v63, %v601_v62  ;;  %v1225_v9 = vpack.c.bf16 %v1880_v1, %v1878_v54  ;;  %v1888_v14 = vmax.f32 %v551_v2, 0.0  ;;  %v835_v24 = vmul.f32 %v602_v63, %v602_v63 }
 0x15e   : > { %v863_v10 = vadd.f32 %v862_v5, %v832_v4  ;;  %v1180_v11 = vpack.c.bf16 %v600_v6, %v599_v58  ;;  %v792_v12 = vadd.f32 %v791_v3, %v600_v6  ;;  %v833_v13 = vmul.f32 %v600_v6, %v600_v6 }
 0x15f   : > { %1249 = vst [vmem:[%s1872_s24 + $0x18] sm:$0xff] %v1185_v7   ;;  %1257 = vst [vmem:[%s1872_s24 + $0x58] sm:$0xff] %v1225_v9   ;;  %v1220_v21 = vpack.c.bf16 %v1888_v14, %v1882_v8 }
 0x160   : > { %1248 = vst [vmem:[%s1872_s24 + $0x10] sm:$0xff] %v1180_v11   ;;  %v793_v16 = vadd.f32 %v792_v12, %v601_v62  ;;  %v864_v17 = vadd.f32 %v863_v10, %v833_v13  ;;  %v1312_v18 = vpop.f32.mrb[8].mxu0  ;;  %v1328_v19 = vpop.f32.mrb[8].mxu1 }
 0x161   : > { %v500_v20 = vpop.f32.mrb[9].mxu0  ;;  %v1893_v22 = vmax.f32 %v1328_v19, 0.0  ;;  %v564_v23 = vpop.f32.mrb[9].mxu1  ;;  %v605_v31 = vmax.f32 %v1312_v18, 0.0  ;;  %1256 = vst [vmem:[%s1872_s24 + $0x50] sm:$0xff] %v1220_v21  }
 0x162   : > { %v865_v25 = vadd.f32 %v864_v17, %v834_v15  ;;  %v603_v26 = vmax.f32 %v500_v20, 0.0  ;;  %v794_v27 = vadd.f32 %v793_v16, %v602_v63  ;;  %v1313_v29 = vpop.f32.mrb[10].mxu0  ;;  %v1329_v30 = vpop.f32.mrb[10].mxu1  ;;  %v1898_v44 = vmax.f32 %v564_v23, 0.0 }
 0x163   : > { %v606_v33 = vmax.f32 %v1313_v29, 0.0  ;;  %v503_v34 = vpop.f32.mrb[11].mxu0  ;;  %v1896_v35 = vmax.f32 %v1329_v30, 0.0  ;;  %v567_v36 = vpop.f32.mrb[11].mxu1  ;;  %v838_v51 = vmul.f32 %v605_v31, %v605_v31 }
 0x164   : > { %v795_v38 = vadd.f32 %v794_v27, %v603_v26  ;;  %v836_v39 = vmul.f32 %v603_v26, %v603_v26  ;;  %v866_v41 = vadd.f32 %v865_v25, %v835_v24  ;;  %v604_v42 = vmax.f32 %v503_v34, 0.0 }
 0x165   : > { %v1195_v43 = vpack.c.bf16 %v606_v33, %v605_v31  ;;  %v1235_v45 = vpack.c.bf16 %v1896_v35, %v1893_v22  ;;  %v1904_v50 = vmax.f32 %v567_v36, 0.0  ;;  %v839_v61 = vmul.f32 %v606_v33, %v606_v33 }
 0x166   : > { %v867_v46 = vadd.f32 %v866_v41, %v836_v39  ;;  %v1190_v47 = vpack.c.bf16 %v604_v42, %v603_v26  ;;  %v796_v48 = vadd.f32 %v795_v38, %v604_v42  ;;  %v837_v49 = vmul.f32 %v604_v42, %v604_v42 }
 0x167   : > { %1251 = vst [vmem:[%s1872_s24 + $0x28] sm:$0xff] %v1195_v43   ;;  %1259 = vst [vmem:[%s1872_s24 + $0x68] sm:$0xff] %v1235_v45   ;;  %v1230_v58 = vpack.c.bf16 %v1904_v50, %v1898_v44 }
 0x168   : > { %1250 = vst [vmem:[%s1872_s24 + $0x20] sm:$0xff] %v1190_v47   ;;  %v797_v52 = vadd.f32 %v796_v48, %v605_v31  ;;  %v868_v53 = vadd.f32 %v867_v46, %v837_v49  ;;  %v1316_v55 = vpop.f32.mrb[12].mxu0  ;;  %v1332_v56 = vpop.f32.mrb[12].mxu1 }
 0x169   : > { %v516_v57 = vpop.f32.mrb[13].mxu0  ;;  %v1909_v59 = vmax.f32 %v1332_v56, 0.0  ;;  %v580_v60 = vpop.f32.mrb[13].mxu1  ;;  %v609_v4 = vmax.f32 %v1316_v55, 0.0  ;;  %1258 = vst [vmem:[%s1872_s24 + $0x60] sm:$0xff] %v1230_v58  }
 0x16a   : > { %v869_v62 = vadd.f32 %v868_v53, %v838_v51  ;;  %v607_v63 = vmax.f32 %v516_v57, 0.0  ;;  %v798_v0 = vadd.f32 %v797_v52, %v606_v33  ;;  %v1317_v2 = vpop.f32.mrb[14].mxu0  ;;  %v1333_v3 = vpop.f32.mrb[14].mxu1  ;;  %v1914_v16 = vmax.f32 %v580_v60, 0.0 }
 0x16b   : > { %v610_v5 = vmax.f32 %v1317_v2, 0.0  ;;  %v519_v6 = vpop.f32.mrb[15].mxu0  ;;  %v1912_v7 = vmax.f32 %v1333_v3, 0.0  ;;  %v583_v9 = vpop.f32.mrb[15].mxu1  ;;  %v842_v24 = vmul.f32 %v609_v4, %v609_v4  ;;  %v844_v33 = vmul.f32 %v1860_v32, %v1860_v32 }
 0x16c   : > { %v799_v10 = vadd.f32 %v798_v0, %v607_v63  ;;  %v840_v11 = vmul.f32 %v607_v63, %v607_v63  ;;  %v870_v12 = vadd.f32 %v869_v62, %v839_v61  ;;  %v608_v13 = vmax.f32 %v519_v6, 0.0 }
 0x16d   : > { %v1205_v15 = vpack.c.bf16 %v610_v5, %v609_v4  ;;  %v1245_v17 = vpack.c.bf16 %v1912_v7, %v1909_v59  ;;  %v1922_v23 = vmax.f32 %v583_v9, 0.0  ;;  %v843_v29 = vmul.f32 %v610_v5, %v610_v5 }
 0x16e   : > { %v871_v18 = vadd.f32 %v870_v12, %v840_v11  ;;  %v1200_v19 = vpack.c.bf16 %v608_v13, %v607_v63  ;;  %v800_v20 = vadd.f32 %v799_v10, %v608_v13  ;;  %v841_v21 = vmul.f32 %v608_v13, %v608_v13 }
 0x16f   : > { %1253 = vst [vmem:[%s1872_s24 + $0x38] sm:$0xff] %v1205_v15   ;;  %1261 = vst [vmem:[%s1872_s24 + $0x78] sm:$0xff] %v1245_v17   ;;  %v1240_v27 = vpack.c.bf16 %v1922_v23, %v1914_v16 }
 0x170   : > { %1252 = vst [vmem:[%s1872_s24 + $0x30] sm:$0xff] %v1200_v19   ;;  %v801_v25 = vadd.f32 %v800_v20, %v609_v4  ;;  %v872_v26 = vadd.f32 %v871_v18, %v841_v21 }
 0x171   : > { %1260 = vst [vmem:[%s1872_s24 + $0x70] sm:$0xff] %v1240_v27  }
 0x172   : > { %v873_v30 = vadd.f32 %v872_v26, %v842_v24  ;;  %v802_v31 = vadd.f32 %v801_v25, %v610_v5 }
 0x174   : > { %v803_v34 = vadd.f32 %v802_v31, %v1860_v32  ;;  %v874_v36 = vadd.f32 %v873_v30, %v843_v29 }
 0x175   : > { %1528 = shalt.err (!%p1525_p5)
}
 0x176   : > { %s1529_s29 = scalar_lea.hbm %s1928_s25, 2048  ;;  %s1533_s20 = scalar_lea.hbm %s2067_s2, 4096 }
 0x177   : > { %p1530_p9 = scmp.ne.s32.totalorder %s1928_s25, %s1529_s29  ;;  %p1534_p3 = scmp.lt.u32.totalorder %s1928_s25, %s2067_s2 }
 0x178   : > { %p1535_p7 = scmp.lt.u32.totalorder %s1533_s20, %s1529_s29  ;;  %p1537_p4 = scmp.lt.u32.totalorder %s1529_s29, %s1928_s25 }
 0x179   : > { %p1531_p1 = pnand %p1530_p9, %p1763_p10 }
 0x17a   : > { %p1536_p13 = por %p1535_p7, %p1534_p3 }
 0x17b   : > { %p1532_p2 = pneg %p1531_p1 }
 0x17c   : > { %p1538_p6 = por %p1537_p4, %p1536_p13 }
 0x17e   : > { %p1539_p8 = pnand %p1538_p6, %p1532_p2 }
 0x180   : > { %1542 = shalt.err (!%p1539_p8)
}
 0x181   : > { %s1641_s9 = smov 64   ;;  %s1642_s18 = smov 4   ;;  %v875_v32 = vadd.f32 %v874_v36, %v844_v33  ;;  %v804_v38 = vadd.f32 %v803_v34, %v1864_v40  ;;  %v845_v39 = vmul.f32 %v1864_v40, %v1864_v40  ;;  %v846_v41 = vmul.f32 %v1858_v28, %v1858_v28  ;;  %v787_v26 = vld [vmem:[%s1855_s22] sm:$0x1]  ;;  %v827_v29 = vld [vmem:[%s1855_s22 + $0x1] sm:$0x1] }
 0x182   : > { %1356 = dma.vmem_to_hbm [thread:$0]  (%p1763_p10), %s1930_s11, 2048, %s1928_s25, %s900_s8, %s1641_s9, %s1641_s9, %s1642_s18   ;;  %v847_v45 = vmul.f32 %v1862_v37, %v1862_v37  ;;  %v848_v48 = vmul.f32 %v1882_v8, %v1882_v8  ;;  %v849_v53 = vmul.f32 %v1888_v14, %v1888_v14  ;;  %v853_v63 = vmul.f32 %v1904_v50, %v1904_v50 }
 0x183   : > { %v805_v42 = vadd.f32 %v804_v38, %v1858_v28  ;;  %v876_v43 = vadd.f32 %v875_v32, %v845_v39  ;;  %v850_v28 = vmul.f32 %v1878_v54, %v1878_v54  ;;  %v857_v10 = vmul.f32 %v1922_v23, %v1922_v23  ;;  %s1130_s11 = sshll.u32 %s1625_s15, 7  ;;  %s935_s25 = sshll.u32 %s1855_s22, 4  ;;  %s2017_s25 = int_to_ptr.vmem [resolvable:$true] %s935_s25 }
 0x184   : > { %s2015_s21 = scalar_lea.hbm %s2068_s3, %s1130_s11  ;;  %s905_s4 = scalar_lea.sflag [#allocation9], %s1822_s30 }
 0x185   : > { %v877_v46 = vadd.f32 %v876_v43, %v846_v41  ;;  %v806_v47 = vadd.f32 %v805_v42, %v1862_v37  ;;  %v851_v37 = vmul.f32 %v1880_v1, %v1880_v1  ;;  %s1543_s6 = scalar_lea.vmem %s2017_s25, 128  ;;  %s1643_s15 = smov [#allocation8]  }
 0x186   : > { %p1544_p12 = scmp.ne.s32.totalorder %s2017_s25, %s1543_s6  ;;  %s1547_s29 = sshll.u32 %s1643_s15, 4  ;;  %s1548_s29 = int_to_ptr.vmem [resolvable:$false] %s1547_s29 }
 0x187   : > { %v807_v49 = vadd.f32 %v806_v47, %v1882_v8  ;;  %v878_v51 = vadd.f32 %v877_v46, %v847_v45  ;;  %v852_v8 = vmul.f32 %v1898_v44, %v1898_v44  ;;  %s1549_s7 = scalar_lea.vmem %s1548_s29, 256  ;;  %p1550_p5 = scmp.lt.s32.totalorder %s2017_s25, %s1548_s29 }
 0x188   : > { %p1545_p11 = pnand %p1544_p12, %p1763_p10  ;;  %p1551_p9 = scmp.lt.s32.totalorder %s1549_s7, %s1543_s6 }
 0x189   : > { %v879_v52 = vadd.f32 %v878_v51, %v848_v48  ;;  %v808_v40 = vadd.f32 %v807_v49, %v1888_v14 }
 0x18a   : > { %p1546_p0 = pneg %p1545_p11  ;;  %p1552_p1 = por %p1551_p9, %p1550_p5 }
 0x18b   : > { %v809_v55 = vadd.f32 %v808_v40, %v1878_v54  ;;  %v880_v56 = vadd.f32 %v879_v52, %v849_v53  ;;  %v854_v54 = vmul.f32 %v1893_v22, %v1893_v22 }
 0x18c   : > { %p1553_p2 = pnand %p1552_p1, %p1546_p0 }
 0x18d   : > { %v881_v57 = vadd.f32 %v880_v56, %v850_v28  ;;  %v810_v58 = vadd.f32 %v809_v55, %v1880_v1  ;;  %v855_v1 = vmul.f32 %v1896_v35, %v1896_v35 }
 0x18f   : > { %v811_v60 = vadd.f32 %v810_v58, %v1898_v44  ;;  %v882_v61 = vadd.f32 %v881_v57, %v851_v37  ;;  %v856_v44 = vmul.f32 %v1914_v16, %v1914_v16 }
 0x191   : > { %v883_v62 = vadd.f32 %v882_v61, %v852_v8  ;;  %v812_v14 = vadd.f32 %v811_v60, %v1904_v50 }
 0x193   : > { %v813_v0 = vadd.f32 %v812_v14, %v1893_v22  ;;  %v884_v2 = vadd.f32 %v883_v62, %v853_v63  ;;  %v858_v22 = vmul.f32 %v1909_v59, %v1909_v59 }
 0x195   : > { %v885_v3 = vadd.f32 %v884_v2, %v854_v54  ;;  %v814_v4 = vadd.f32 %v813_v0, %v1896_v35  ;;  %v859_v35 = vmul.f32 %v1912_v7, %v1912_v7 }
 0x197   : > { %v815_v5 = vadd.f32 %v814_v4, %v1914_v16  ;;  %v886_v6 = vadd.f32 %v885_v3, %v855_v1 }
 0x199   : > { %v887_v9 = vadd.f32 %v886_v6, %v856_v44  ;;  %v816_v50 = vadd.f32 %v815_v5, %v1922_v23 }
 0x19b   : > { %v817_v11 = vadd.f32 %v816_v50, %v1909_v59  ;;  %v888_v12 = vadd.f32 %v887_v9, %v857_v10 }
 0x19d   : > { %v818_v13 = vadd.f32 %v817_v11, %v1912_v7  ;;  %v889_v15 = vadd.f32 %v888_v12, %v858_v22 }
 0x19f   : > { %v819_v16 = vrot.slane %v818_v13, 4  ;;  %v890_v17 = vadd.f32 %v889_v15, %v859_v35 }
 0x1a1   : > { %v820_v18 = vadd.f32 %v819_v16, %v818_v13  ;;  %v891_v19 = vrot.slane %v890_v17, 4 }
 0x1a3   : > { %v821_v20 = vrot.slane %v820_v18, 2  ;;  %v892_v21 = vadd.f32 %v891_v19, %v890_v17 }
 0x1a5   : > { %v822_v23 = vadd.f32 %v821_v20, %v820_v18  ;;  %v893_v59 = vrot.slane %v892_v21, 2 }
 0x1a7   : > { %v823_v24 = vrot.slane %v822_v23, 1  ;;  %v894_v25 = vadd.f32 %v893_v59, %v892_v21 }
 0x1a9   : > { %v824_v27 = vadd.f32 %v823_v24, %v822_v23  ;;  %v895_v7 = vrot.slane %v894_v25, 1 }
 0x1ab   : > { %v896_v30 = vadd.f32 %v895_v7, %v894_v25  ;;  %v825_v31 = vadd.f32 %v824_v27, %v787_v26 }
 0x1ad   : > { %826 = vst [vmem:[%s1855_s22] sm:$0x1] %v825_v31  ;;  %v897_v33 = vadd.f32 %v896_v30, %v827_v29 }
 0x1af   : > { %898 = vst [vmem:[%s1855_s22 + $0x1] sm:$0x1] %v897_v33 }
 0x1b0   : > { %1556 = shalt.err (!%p1553_p2)
}
 0x1b1   : > { %s1557_s30 = scalar_lea.hbm %s2015_s21, 128  ;;  %s1561_s20 = scalar_lea.hbm %s2068_s3, 256 }
 0x1b2   : > { %p1558_p3 = scmp.ne.s32.totalorder %s2015_s21, %s1557_s30  ;;  %p1562_p4 = scmp.lt.u32.totalorder %s2015_s21, %s2068_s3 }
 0x1b3   : > { %p1563_p6 = scmp.lt.u32.totalorder %s1561_s20, %s1557_s30  ;;  %p1565_p12 = scmp.lt.u32.totalorder %s1557_s30, %s2015_s21 }
 0x1b4   : > { %p1559_p7 = pnand %p1558_p3, %p1763_p10 }
 0x1b5   : > { %p1564_p8 = por %p1563_p6, %p1562_p4 }
 0x1b6   : > { %p1560_p13 = pneg %p1559_p7 }
 0x1b7   : > { %p1566_p11 = por %p1565_p12, %p1564_p8 }
 0x1b9   : > { %p1567_p0 = pnand %p1566_p11, %p1560_p13 }
 0x1bb   : > { %1570 = shalt.err (!%p1567_p0)
}
 0x1bc   : > { %1357 = dma.vmem_to_hbm [thread:$0]  (%p1763_p10), %s2017_s25, 128, %s2015_s21, %s905_s4  }
 0x1bd PF: > { %s947_s9 = sand.u32 1, %s1613_s12   ;;  %p2086_p5 = scmp.ne.s32.totalorder %s2076_s23, 0 }
 0x1be   : > { %p2087_p9 = scmp.ge.s32.totalorder %s1633_s17, 2  ;;  %s948_s18 = scalar_lea.sflag [#allocation4], %s947_s9 }
 0x1c0   : > { %p1369_p1 = pnand %p2087_p9, %p2086_p5 }
 0x1c2   : > { %1604 = dma.done.wait (!%p1369_p1), %s948_s18, 2048  }
 0x1c3   : > { %1606 = vsyncadd (!%p1369_p1), %s948_s18, 4294965248  ;;  %s957_s11 = scalar_lea.sflag [#allocation9], %s947_s9 }
 0x1c4   : > { %1608 = dma.done.wait (!%p1369_p1), %s957_s11, 128  }
 0x1c5   : > { %1610 = vsyncadd (!%p1369_p1), %s957_s11, 4294967168  ;;  %s24_s17 = sadd.s32 1, %s1633_s17   ;;  %s2088_s12 = smov %s1617_s13 }
 0x1c6   : > { %p21_p2 = scmp.ge.s32.totalorder %s24_s17, 4   ;;  %s2089_s13 = smov %s1621_s14 }
 0x1c7   : > { %s2090_s14 = smov %s1772_s5  ;;  %s2091_s15 = smov %s1629_s16 }
 0x1c8   : > { %s2092_s16 = smov %s2094_s28  ;;  %23 = sbr.rel (!%p21_p2) target bundleno = 9 (0x9), region = 98 }
 0x1cf   :  { %962 = vsyncpa [#allocation3], 1 }
 0x1d0   :  { %964 = vsyncpa [#allocation3 + $0x1], 1 }
 0x1d1   :  { %965 = vsyncpa [#allocation6], 1 }
 0x1d2   :  { %966 = vsyncpa [#allocation4], 1 }
 0x1d3   :  { %968 = vsyncpa [#allocation4 + $0x1], 1 }
 0x1d4   :  { %969 = vsyncpa [#allocation9], 1 }
 0x1d5   :  { %971 = vsyncpa [#allocation9 + $0x1], 1 }

</bundles_post_ra>
